<compile_context>
chip_gen: v7x
topology: tpu7x:2x2x1
jax: 0.10.0
libtpu: 0.0.40
codegen_flags: <defaults>
</compile_context>

<pallas_src>
import jax
import jax.numpy as jnp
from jax import lax
from jax.experimental import pallas as pl
from jax.experimental.pallas import tpu as pltpu


def _silu_to_bf16(x):
    # tanh-based SiLU: one EUP op (tanh); mul/add ride the VALU which has
    # slack.  The bf16 downcast is the LAST op of the fused bias+SiLU chain so
    # only the bf16 activation is materialized before the next MXU dot.
    return (0.5 * x * (jnp.tanh(0.5 * x) + 1.0)).astype(jnp.bfloat16)


def scapenet_kernel(x_ref,
                    w1_ref, b1_ref,
                    w2_ref, b2_ref,
                    w3_ref, b3_ref,
                    w4_ref, b4_ref,
                    o_ref):
    # x_ref: (block_n, in_dim) f32 tile of the batch.
    # w_i:   (fan_out, fan_in) bf16 (torch layout), grid-invariant residents.
    # b_i:   (fan_out, 1) f32, broadcast over the lane (batch) axis.
    # o_ref: (out_dim, block_n) f32 -> lane-dense store.
    x = x_ref[...].astype(jnp.bfloat16)                       # (block_n, in)

    # Contract the last axis of both operands: (256,in) x (block_n,in)
    # -> (256, block_n); batch stays on lanes, no wrapper transpose needed.
    h = lax.dot_general(w1_ref[...], x, (((1,), (1,)), ((), ())),
                        preferred_element_type=jnp.float32)
    h = _silu_to_bf16(h + b1_ref[...])                        # (256, block_n) bf16

    h = jnp.dot(w2_ref[...], h, preferred_element_type=jnp.float32) + b2_ref[...]
    h = _silu_to_bf16(h)                                      # (64, block_n) bf16

    h = jnp.dot(w3_ref[...], h, preferred_element_type=jnp.float32) + b3_ref[...]
    h = _silu_to_bf16(h)                                      # (16, block_n) bf16

    h = jnp.dot(w4_ref[...], h, preferred_element_type=jnp.float32) + b4_ref[...]
    o_ref[...] = h.astype(o_ref.dtype)                        # (out_dim, block_n)


def _round_up(x, m):
    return -(-x // m) * m


def scapenet_forward(z, params, *, block_n=1024):
    """z: (N, in_dim) float32.  params: torch-layout weights/biases.

    Returns (N, out_dim) float32.
    """
    n, in_dim = z.shape
    out_dim = params["w4"].shape[0]

    # Lane-dense, (8,128)-legal batch tile.
    block_n = _round_up(max(int(block_n), 1), 128)
    n_ru = _round_up(n, 128)
    block_n = min(block_n, n_ru)                 # don't over-pad small batches
    if n_ru >= 2 * 128:                          # >=2 parallel steps (v7x: 2 TCs)
        block_n = min(block_n, _round_up(n_ru // 2, 128))
    n_pad = _round_up(n, block_n)
    if n_pad != n:
        z = jnp.pad(z, ((0, n_pad - n), (0, 0)))
    z = z.astype(jnp.float32)

    # MXU operands in bf16; biases stay f32 (added after the f32-accumulated dot).
    w = [params[f"w{i}"].astype(jnp.bfloat16) for i in range(1, 5)]
    b = [params[f"b{i}"].astype(jnp.float32).reshape(-1, 1) for i in range(1, 5)]

    grid = (n_pad // block_n,)

    def full_spec(shape):
        # Full-extent, grid-invariant block: loaded once, stays resident.
        return pl.BlockSpec(shape, lambda i: (0,) * len(shape))

    # Advisory cost so XLA schedules neighbors around the custom call.
    flops = 2 * n_pad * (in_dim * 256 + 256 * 64 + 64 * 16 + 16 * out_dim)
    transcendentals = n_pad * (256 + 64 + 16)
    bytes_accessed = (n_pad * in_dim * 4 + n_pad * out_dim * 4
                      + sum(int(wi.size) for wi in w) * 2
                      + sum(int(bi.size) for bi in b) * 4)
    cost = pl.CostEstimate(flops=flops, transcendentals=transcendentals,
                           bytes_accessed=bytes_accessed)

    # Rough per-tile VMEM footprint: double-buffered I/O tiles + resident
    # weights + live activations (f32 SiLU temp + bf16 copy of the largest).
    est_vmem = (2 * block_n * in_dim * 4
                + 2 * out_dim * block_n * 4
                + block_n * (256 + 64 + 16) * 6
                + 512 * 1024)
    if est_vmem > 12 * 1024 * 1024:
        # Only needed when sweeping very large block_n (default scoped VMEM is
        # 16 MiB on v5e / 32 MiB on v6e+); cap well under v7x's 64 MiB.
        compiler_params = pltpu.CompilerParams(
            dimension_semantics=("parallel",),
            vmem_limit_bytes=min(2 * est_vmem, 48 * 1024 * 1024))
    else:
        compiler_params = pltpu.CompilerParams(
            dimension_semantics=("parallel",))

    out_t = pl.pallas_call(
        scapenet_kernel,
        out_shape=jax.ShapeDtypeStruct((out_dim, n_pad), jnp.float32),
        grid_spec=pltpu.PrefetchScalarGridSpec(
            num_scalar_prefetch=0,
            grid=grid,
            in_specs=[
                pl.BlockSpec((block_n, in_dim), lambda i: (i, 0)),
                full_spec(w[0].shape), full_spec(b[0].shape),
                full_spec(w[1].shape), full_spec(b[1].shape),
                full_spec(w[2].shape), full_spec(b[2].shape),
                full_spec(w[3].shape), full_spec(b[3].shape),
            ],
            out_specs=pl.BlockSpec((out_dim, block_n), lambda i: (0, i)),
        ),
        compiler_params=compiler_params,
        cost_estimate=cost,
    )(z, w[0], b[0], w[1], b[1], w[2], b[2], w[3], b[3])

    # (out_dim, n_pad) -> (n, out_dim); for out_dim=1 this is effectively a
    # reshape, so the wrapper-side cost is negligible.
    return out_t.T[:n]


def init_params(key, in_dim, out_dim):
    """torch.nn.Linear default init: U(-k, k), k = 1/sqrt(fan_in); weight (out, in)."""
    dims = [(in_dim, 256), (256, 64), (64, 16), (16, out_dim)]
    params = {}
    for idx, (fi, fo) in enumerate(dims, start=1):
        key, kw, kb = jax.random.split(key, 3)
        bound = 1.0 / jnp.sqrt(jnp.float32(fi))
        params[f"w{idx}"] = jax.random.uniform(
            kw, (fo, fi), jnp.float32, minval=-bound, maxval=bound)
        params[f"b{idx}"] = jax.random.uniform(
            kb, (fo,), jnp.float32, minval=-bound, maxval=bound)
    return params


def reference_forward(z, params):
    h = z
    for i in range(1, 5):
        h = h @ params[f"w{i}"].T + params[f"b{i}"]
        if i < 4:
            h = h * jax.nn.sigmoid(h)
    return h


if __name__ == "__main__":
    # in_dim = 8 (columns[1:9] of the original dataframe), out_dim = 1.
    in_dim, out_dim = 8, 1
    batch = 1024  # lane-dense batch; clamped block_n gives 2 parallel grid steps

    key = jax.random.PRNGKey(0)
    key, kz = jax.random.split(key)
    z = jax.random.normal(kz, (batch, in_dim), dtype=jnp.float32)

    params = init_params(key, in_dim, out_dim)

    out = scapenet_forward(z, params, block_n=1024)
    out = jax.block_until_ready(out)

    ref = reference_forward(z, params)
    assert out.shape == (batch, out_dim)
    max_err = float(jnp.max(jnp.abs(out - ref)))
    # bf16 MXU operands / bf16 activations => loose-but-safe tolerance vs f32 ref.
    assert jnp.allclose(out, ref, atol=5e-2, rtol=5e-2), (
        f"mismatch vs reference, max abs err = {max_err}")

    print("KERNEL_OK")
</pallas_src>

<mosaic_0001>
module attributes {stable_mosaic.version = 11 : i64} {
  func.func @scapenet_kernel(%arg0: i32, %arg1: memref<512x8xf32, #tpu.memory_space<vmem>>, %arg2: memref<256x8xbf16, #tpu.memory_space<vmem>>, %arg3: memref<256x1xf32, #tpu.memory_space<vmem>>, %arg4: memref<64x256xbf16, #tpu.memory_space<vmem>>, %arg5: memref<64x1xf32, #tpu.memory_space<vmem>>, %arg6: memref<16x64xbf16, #tpu.memory_space<vmem>>, %arg7: memref<16x1xf32, #tpu.memory_space<vmem>>, %arg8: memref<1x16xbf16, #tpu.memory_space<vmem>>, %arg9: memref<1x1xf32, #tpu.memory_space<vmem>>, %arg10: memref<1x512xf32, #tpu.memory_space<vmem>>) attributes {dimension_semantics = [#tpu.dimension_semantics<parallel>], iteration_bounds = array<i64: 2>, scalar_prefetch = 0 : i64, scratch_operands = 0 : i64, tpu.core_type = #tpu.core_type<tc>, window_params = [{transform_indices = @transform_0, window_bounds = array<i64: 512, 8>}, {pipeline_mode = #tpu.pipeline_mode<synchronous>, transform_indices = @transform_1, window_bounds = array<i64: 256, 8>}, {pipeline_mode = #tpu.pipeline_mode<synchronous>, transform_indices = @transform_2, window_bounds = array<i64: 256, 1>}, {pipeline_mode = #tpu.pipeline_mode<synchronous>, transform_indices = @transform_3, window_bounds = array<i64: 64, 256>}, {pipeline_mode = #tpu.pipeline_mode<synchronous>, transform_indices = @transform_4, window_bounds = array<i64: 64, 1>}, {pipeline_mode = #tpu.pipeline_mode<synchronous>, transform_indices = @transform_5, window_bounds = array<i64: 16, 64>}, {pipeline_mode = #tpu.pipeline_mode<synchronous>, transform_indices = @transform_6, window_bounds = array<i64: 16, 1>}, {pipeline_mode = #tpu.pipeline_mode<synchronous>, transform_indices = @transform_7, window_bounds = array<i64: 1, 16>}, {pipeline_mode = #tpu.pipeline_mode<synchronous>, transform_indices = @transform_8, window_bounds = array<i64: 1, 1>}, {transform_indices = @transform_9, window_bounds = array<i64: 1, 512>}]} {
    %c0 = arith.constant 0 : index
    %c0_0 = arith.constant 0 : index
    %0 = vector.load %arg1[%c0, %c0_0] : memref<512x8xf32, #tpu.memory_space<vmem>>, vector<512x8xf32>
    %1 = arith.truncf %0 : vector<512x8xf32> to vector<512x8xbf16>
    %c0_1 = arith.constant 0 : index
    %c0_2 = arith.constant 0 : index
    %2 = vector.load %arg2[%c0_1, %c0_2] : memref<256x8xbf16, #tpu.memory_space<vmem>>, vector<256x8xbf16>
    %cst = arith.constant dense<0.000000e+00> : vector<256x512xf32>
    %3 = tpu.matmul %2, %1, %cst {dimension_numbers = #tpu.dot_dimension_numbers<[1], [1], [0], [0], [0, 0, 1, 0], [], []>} : vector<256x8xbf16>, vector<512x8xbf16>, vector<256x512xf32> -> vector<256x512xf32>
    %c0_3 = arith.constant 0 : index
    %c0_4 = arith.constant 0 : index
    %4 = vector.load %arg3[%c0_3, %c0_4] : memref<256x1xf32, #tpu.memory_space<vmem>>, vector<256x1xf32>
    %5 = vector.broadcast %4 : vector<256x1xf32> to vector<256x512xf32>
    %6 = arith.addf %3, %5 : vector<256x512xf32>
    %cst_5 = arith.constant 5.000000e-01 : f32
    %7 = vector.broadcast %cst_5 : f32 to vector<256x512xf32>
    %8 = arith.mulf %7, %6 : vector<256x512xf32>
    %cst_6 = arith.constant 5.000000e-01 : f32
    %9 = vector.broadcast %cst_6 : f32 to vector<256x512xf32>
    %10 = arith.mulf %9, %6 : vector<256x512xf32>
    %11 = math.tanh %10 : vector<256x512xf32>
    %cst_7 = arith.constant 1.000000e+00 : f32
    %12 = vector.broadcast %cst_7 : f32 to vector<256x512xf32>
    %13 = arith.addf %11, %12 : vector<256x512xf32>
    %14 = arith.mulf %8, %13 : vector<256x512xf32>
    %15 = arith.truncf %14 : vector<256x512xf32> to vector<256x512xbf16>
    %c0_8 = arith.constant 0 : index
    %c0_9 = arith.constant 0 : index
    %16 = vector.load %arg4[%c0_8, %c0_9] : memref<64x256xbf16, #tpu.memory_space<vmem>>, vector<64x256xbf16>
    %cst_10 = arith.constant dense<0.000000e+00> : vector<64x512xf32>
    %17 = tpu.matmul %16, %15, %cst_10 {dimension_numbers = #tpu.dot_dimension_numbers<[1], [0], [0], [1], [0, 0, 1, 1], [], []>} : vector<64x256xbf16>, vector<256x512xbf16>, vector<64x512xf32> -> vector<64x512xf32>
    %c0_11 = arith.constant 0 : index
    %c0_12 = arith.constant 0 : index
    %18 = vector.load %arg5[%c0_11, %c0_12] : memref<64x1xf32, #tpu.memory_space<vmem>>, vector<64x1xf32>
    %19 = vector.broadcast %18 : vector<64x1xf32> to vector<64x512xf32>
    %20 = arith.addf %17, %19 : vector<64x512xf32>
    %cst_13 = arith.constant 5.000000e-01 : f32
    %21 = vector.broadcast %cst_13 : f32 to vector<64x512xf32>
    %22 = arith.mulf %21, %20 : vector<64x512xf32>
    %cst_14 = arith.constant 5.000000e-01 : f32
    %23 = vector.broadcast %cst_14 : f32 to vector<64x512xf32>
    %24 = arith.mulf %23, %20 : vector<64x512xf32>
    %25 = math.tanh %24 : vector<64x512xf32>
    %cst_15 = arith.constant 1.000000e+00 : f32
    %26 = vector.broadcast %cst_15 : f32 to vector<64x512xf32>
    %27 = arith.addf %25, %26 : vector<64x512xf32>
    %28 = arith.mulf %22, %27 : vector<64x512xf32>
    %29 = arith.truncf %28 : vector<64x512xf32> to vector<64x512xbf16>
    %c0_16 = arith.constant 0 : index
    %c0_17 = arith.constant 0 : index
    %30 = vector.load %arg6[%c0_16, %c0_17] : memref<16x64xbf16, #tpu.memory_space<vmem>>, vector<16x64xbf16>
    %cst_18 = arith.constant dense<0.000000e+00> : vector<16x512xf32>
    %31 = tpu.matmul %30, %29, %cst_18 {dimension_numbers = #tpu.dot_dimension_numbers<[1], [0], [0], [1], [0, 0, 1, 1], [], []>} : vector<16x64xbf16>, vector<64x512xbf16>, vector<16x512xf32> -> vector<16x512xf32>
    %c0_19 = arith.constant 0 : index
    %c0_20 = arith.constant 0 : index
    %32 = vector.load %arg7[%c0_19, %c0_20] : memref<16x1xf32, #tpu.memory_space<vmem>>, vector<16x1xf32>
    %33 = vector.broadcast %32 : vector<16x1xf32> to vector<16x512xf32>
    %34 = arith.addf %31, %33 : vector<16x512xf32>
    %cst_21 = arith.constant 5.000000e-01 : f32
    %35 = vector.broadcast %cst_21 : f32 to vector<16x512xf32>
    %36 = arith.mulf %35, %34 : vector<16x512xf32>
    %cst_22 = arith.constant 5.000000e-01 : f32
    %37 = vector.broadcast %cst_22 : f32 to vector<16x512xf32>
    %38 = arith.mulf %37, %34 : vector<16x512xf32>
    %39 = math.tanh %38 : vector<16x512xf32>
    %cst_23 = arith.constant 1.000000e+00 : f32
    %40 = vector.broadcast %cst_23 : f32 to vector<16x512xf32>
    %41 = arith.addf %39, %40 : vector<16x512xf32>
    %42 = arith.mulf %36, %41 : vector<16x512xf32>
    %43 = arith.truncf %42 : vector<16x512xf32> to vector<16x512xbf16>
    %c0_24 = arith.constant 0 : index
    %c0_25 = arith.constant 0 : index
    %44 = vector.load %arg8[%c0_24, %c0_25] : memref<1x16xbf16, #tpu.memory_space<vmem>>, vector<1x16xbf16>
    %cst_26 = arith.constant dense<0.000000e+00> : vector<1x512xf32>
    %45 = tpu.matmul %44, %43, %cst_26 {dimension_numbers = #tpu.dot_dimension_numbers<[1], [0], [0], [1], [0, 0, 1, 1], [], []>} : vector<1x16xbf16>, vector<16x512xbf16>, vector<1x512xf32> -> vector<1x512xf32>
    %c0_27 = arith.constant 0 : index
    %c0_28 = arith.constant 0 : index
    %46 = vector.load %arg9[%c0_27, %c0_28] : memref<1x1xf32, #tpu.memory_space<vmem>>, vector<1x1xf32>
    %47 = vector.broadcast %46 : vector<1x1xf32> to vector<1x512xf32>
    %48 = arith.addf %45, %47 : vector<1x512xf32>
    %c0_29 = arith.constant 0 : index
    %c0_30 = arith.constant 0 : index
    %49 = vector.load %arg10[%c0_29, %c0_30] : memref<1x512xf32, #tpu.memory_space<vmem>>, vector<1x512xf32>
    tpu.vector_store %arg10[%c0_29, %c0_30], %48 {strides = array<i32>} : memref<1x512xf32, #tpu.memory_space<vmem>>, vector<1x512xf32>,
    return
  }
  func.func @transform_0(%arg0: i32) -> (i32, i32) {
    %c0_i32 = arith.constant 0 : i32
    %c0_i32_0 = arith.constant 0 : i32
    return %arg0, %c0_i32 : i32, i32
  }
  func.func @transform_1(%arg0: i32) -> (i32, i32) {
    %c0_i32 = arith.constant 0 : i32
    %c0_i32_0 = arith.constant 0 : i32
    %c0_i32_1 = arith.constant 0 : i32
    return %c0_i32, %c0_i32_0 : i32, i32
  }
  func.func @transform_2(%arg0: i32) -> (i32, i32) {
    %c0_i32 = arith.constant 0 : i32
    %c0_i32_0 = arith.constant 0 : i32
    %c0_i32_1 = arith.constant 0 : i32
    return %c0_i32, %c0_i32_0 : i32, i32
  }
  func.func @transform_3(%arg0: i32) -> (i32, i32) {
    %c0_i32 = arith.constant 0 : i32
    %c0_i32_0 = arith.constant 0 : i32
    %c0_i32_1 = arith.constant 0 : i32
    return %c0_i32, %c0_i32_0 : i32, i32
  }
  func.func @transform_4(%arg0: i32) -> (i32, i32) {
    %c0_i32 = arith.constant 0 : i32
    %c0_i32_0 = arith.constant 0 : i32
    %c0_i32_1 = arith.constant 0 : i32
    return %c0_i32, %c0_i32_0 : i32, i32
  }
  func.func @transform_5(%arg0: i32) -> (i32, i32) {
    %c0_i32 = arith.constant 0 : i32
    %c0_i32_0 = arith.constant 0 : i32
    %c0_i32_1 = arith.constant 0 : i32
    return %c0_i32, %c0_i32_0 : i32, i32
  }
  func.func @transform_6(%arg0: i32) -> (i32, i32) {
    %c0_i32 = arith.constant 0 : i32
    %c0_i32_0 = arith.constant 0 : i32
    %c0_i32_1 = arith.constant 0 : i32
    return %c0_i32, %c0_i32_0 : i32, i32
  }
  func.func @transform_7(%arg0: i32) -> (i32, i32) {
    %c0_i32 = arith.constant 0 : i32
    %c0_i32_0 = arith.constant 0 : i32
    %c0_i32_1 = arith.constant 0 : i32
    return %c0_i32, %c0_i32_0 : i32, i32
  }
  func.func @transform_8(%arg0: i32) -> (i32, i32) {
    %c0_i32 = arith.constant 0 : i32
    %c0_i32_0 = arith.constant 0 : i32
    %c0_i32_1 = arith.constant 0 : i32
    return %c0_i32, %c0_i32_0 : i32, i32
  }
  func.func @transform_9(%arg0: i32) -> (i32, i32) {
    %c0_i32 = arith.constant 0 : i32
    %c0_i32_0 = arith.constant 0 : i32
    return %c0_i32, %arg0 : i32, i32
  }
}

</mosaic_0001>

<bundles_post_ra>
// kernel: tpu_custom_call.1
= control target key start
LH: loop header
LB: loop body
LE: loop exit
PB: predicated region body
PF: predicated region fallthrough
CT: control target
= control target key end

     0   :  { %s5063_s0 = inlined_call_operand.vmem [shape: f32[1024,8], index: 0, kind: input, shape index: {}]   ;;  %s5064_s1 = inlined_call_operand.vmem [shape: bf16[256,8], index: 1, kind: input, shape index: {}]   ;;  %s5065_s2 = inlined_call_operand.vmem [shape: f32[256,1], index: 2, kind: input, shape index: {}]   ;;  %s5066_s3 = inlined_call_operand.vmem [shape: bf16[64,256], index: 3, kind: input, shape index: {}]   ;;  %s5067_s4 = inlined_call_operand.vmem [shape: f32[64,1], index: 4, kind: input, shape index: {}]   ;;  %s5068_s5 = inlined_call_operand.vmem [shape: bf16[16,64], index: 5, kind: input, shape index: {}]   ;;  %s5069_s6 = inlined_call_operand.vmem [shape: f32[16,1], index: 6, kind: input, shape index: {}]   ;;  %s5070_s7 = inlined_call_operand.vmem [shape: bf16[1,16], index: 7, kind: input, shape index: {}]   ;;  %s5071_s8 = inlined_call_operand.<no memory space> [shape: f32[1,1], index: 8, kind: input, shape index: {}]   ;;  %s5072_s9 = inlined_call_operand.hbm [shape: f32[1,1024], index: 9, kind: output, shape index: {}]  }
   0x1   :  { %v14_v0 = vstv %s5071_s8 }
   0x2   :  { %15 = vst [vmem:[#allocation2] sm:$0x1] %v14_v0 }
   0x3   :  { %16 = vsyncpa [#allocation4], 0 }
   0x4   :  { %18 = vsyncpa [#allocation4 + $0x1], 0  ;;  %s3294_s11 = smov 0   ;;  %s3296_s12 = smov 0  }
   0x5   :  { %s3298_s13 = smov 0   ;;  %s3300_s14 = smov 0  }
   0x6 LB: > { %s2579_s8 = sadd.s32 4294967295, %s3236_s14   ;;  %s2580_s15 = sadd.s32 4294967294, %s3236_s14   ;;  %s3236_s14 = sphi %s3300_s14, %s5141_s14   ;;  %s3232_s13 = sphi %s3298_s13, %s5140_s13   ;;  %s3228_s12 = sphi %s3296_s12, %s5139_s12   ;;  %s3224_s11 = sphi %s3294_s11, %s5138_s11  }
   0x7   : > { %s3317_s16 = sadd.s32 1, %s3236_s14   ;;  %s225_s17 = sadd.s32 1, %s3232_s13 }
   0x8   : > { %s222_s18 = ssub.s32 %s3236_s14, %s3317_s16  ;;  %p235_p0 = scmp.ne.s32.totalorder %s3232_s13, %s3228_s12 }
   0x9   : > { %p223_p1 = scmp.eq.s32.totalorder %s222_s18, 0  ;;  %p236_p2 = scmp.eq.s32.totalorder %s2579_s8, 1 }
   0xa   : > { %p241_p3 = scmp.ne.s32.totalorder %s3228_s12, %s3224_s11  ;;  %p242_p4 = scmp.eq.s32.totalorder %s2580_s15, 1 }
   0xb   : > { %s3327_s19 = scalar_select %p223_p1, %s3232_s13, %s225_s17  }
   0xc   : > { %p3329_p5 = por %p236_p2, %p235_p0  ;;  %p3333_p6 = por %p242_p4, %p241_p3 }
   0xd   : > { %p2583_p7 = scmp.ge.s32.totalorder %s3236_s14, 1  ;;  %p293_p8 = scmp.lt.s32.totalorder %s3236_s14, 3 }
   0xf   : > { %p294_p9 = pnand %p2583_p7, %p293_p8 }
  0x11   : > { %297 = sbr.rel (%p294_p9) target bundleno = 1262 (0x4ee), region = 56 }
  0x18   : > { %s3339_s22 = sshll.u32 %s2579_s8, 6  ;;  %v465_v1 = vld [vmem:[%s5065_s2] sm:$0xff]  ;;  %v5073_v2 = vmov 0   ;;  %vm737_vm0 = vcmask 64512   ;;  %v466_v4 = vld [vmem:[%s5065_s2 + $0x8] sm:$0xff]  ;;  %v467_v5 = vld [vmem:[%s5065_s2 + $0x10] sm:$0xff] }
  0x19   : > { %p330_p10 = scmp.lt.s32.totalorder %s3339_s22, 127  ;;  %2807 = vset.pattern.permute.xlu0 %v5073_v2  ;;  %v3349_v3 = vld [vmem:[%s5064_s1] sm:$0xff]   ;;  %2808 = vset.pattern.permute.xlu1 %v5073_v2  ;;  %v468_v6 = vld [vmem:[%s5065_s2 + $0x18] sm:$0xff]  ;;  %v470_v11 = vld [vmem:[%s5065_s2 + $0x28] sm:$0xff]  ;;  %vm2249_vm1 = vcmask 523264   ;;  %vm2386_vm2 = vcmask 130048   ;;  %s5021_s30 = scalar_lea.hbm %s5072_s9, %s3339_s22 }
  0x1a   : > { %499 = vperm.xlu0 %2807, %v465_v1   ;;  %2670 = vmatprep.mubr.msk.bf16.mxu0 %vm737_vm0, %v3349_v3  ;;  %v469_v7 = vld [vmem:[%s5065_s2 + $0x20] sm:$0xff]  ;;  %v471_v21 = vld [vmem:[%s5065_s2 + $0x30] sm:$0xff]  ;;  %v472_v35 = vld [vmem:[%s5065_s2 + $0x38] sm:$0xff]  ;;  %s326_s25 = sand.u32 1, %s3228_s12   ;;  %s3240_s15 = smov [#allocation3]  }
  0x1b   : > { %s331_s27 = scalar_select %p330_p10, %s3339_s22, 127  ;;  %2718 = vmatprep.mubr.msk.bf16.mxu1 %vm737_vm0, %v3349_v3  ;;  %509 = vperm.xlu1 %2808, %v467_v5   ;;  %v473_v41 = vld [vmem:[%s5065_s2 + $0x40] sm:$0xff]  ;;  %v475_v50 = vld [vmem:[%s5065_s2 + $0x50] sm:$0xff] }
  0x1c   : > { %v477_v57 = vld [vmem:[%s5065_s2 + $0x60] sm:$0xff]  ;;  %s2584_s26 = sshll.u32 %s326_s25, 2  ;;  %s2507_s10 = scalar_lea.sflag [#allocation4], %s326_s25 }
  0x1d   : > { %s2586_s8 = sshll.u32 %s331_s27, 3  ;;  %s3178_s17 = sshll.u32 %s3240_s15, 4  ;;  %s3179_s17 = int_to_ptr.vmem [resolvable:$false] %s3178_s17 }
  0x1e   : > { %s3369_s24 = scalar_lea.vmem %s5063_s0, %s2586_s8  ;;  %504 = vperm.xlu0 %2807, %v466_v4   ;;  %s3180_s18 = scalar_lea.vmem %s3179_s17, 128 }
  0x1f   : > { %v353_v8 = vld [vmem:[%s3369_s24 + $0x80] sm:$0xff]  ;;  %v354_v9 = vld [vmem:[%s3369_s24 + $0x88] sm:$0xff]  ;;  %514 = vperm.xlu1 %2808, %v468_v6   ;;  %v355_v20 = vld [vmem:[%s3369_s24 + $0x90] sm:$0xff] }
  0x20   : > { %v385_v10 = vld [vmem:[%s3369_s24 + $0x180] sm:$0xff]  ;;  %v409_v12 = vpack.c.bf16 %v354_v9, %v353_v8  ;;  %v386_v13 = vld [vmem:[%s3369_s24 + $0x188] sm:$0xff]  ;;  %v356_v23 = vld [vmem:[%s3369_s24 + $0x98] sm:$0xff] }
  0x21   : > { %v337_v14 = vld [vmem:[%s3369_s24] sm:$0xff]  ;;  %v338_v15 = vld [vmem:[%s3369_s24 + $0x8] sm:$0xff]  ;;  %v425_v16 = vpack.c.bf16 %v386_v13, %v385_v10  ;;  %v387_v24 = vld [vmem:[%s3369_s24 + $0x190] sm:$0xff]  ;;  %v410_v27 = vpack.c.bf16 %v356_v23, %v355_v20 }
  0x22   : > { %v401_v17 = vpack.c.bf16 %v338_v15, %v337_v14  ;;  %v369_v18 = vld [vmem:[%s3369_s24 + $0x100] sm:$0xff]  ;;  %v370_v19 = vld [vmem:[%s3369_s24 + $0x108] sm:$0xff]  ;;  %2750 = vmatprep.subr.msk.bf16.mxu0 %vm737_vm0, %v409_v12  ;;  %v388_v25 = vld [vmem:[%s3369_s24 + $0x198] sm:$0xff]  ;;  %519 = vperm.xlu0 %2807, %v469_v7  }
  0x23   : > { %v417_v22 = vpack.c.bf16 %v370_v19, %v369_v18  ;;  %2758 = vmatprep.subr.msk.bf16.mxu1 %vm737_vm0, %v425_v16  ;;  %v426_v28 = vpack.c.bf16 %v388_v25, %v387_v24  ;;  %v339_v29 = vld [vmem:[%s3369_s24 + $0x10] sm:$0xff]  ;;  %v340_v30 = vld [vmem:[%s3369_s24 + $0x18] sm:$0xff]  ;;  %524 = vperm.xlu1 %2808, %v470_v11   ;;  %v357_v37 = vld [vmem:[%s3369_s24 + $0xa0] sm:$0xff] }
  0x24   : > { %v787_v26 = vsel %vm737_vm0, %v401_v17, 0  ;;  %v371_v31 = vld [vmem:[%s3369_s24 + $0x110] sm:$0xff]  ;;  %v372_v33 = vld [vmem:[%s3369_s24 + $0x118] sm:$0xff]  ;;  %v402_v34 = vpack.c.bf16 %v340_v30, %v339_v29  ;;  %v358_v38 = vld [vmem:[%s3369_s24 + $0xa8] sm:$0xff] }
  0x25   : > { %2655 = vmatpush3.bf16.xpose.msra.mxu0 %v787_v26  ;;  %v835_v32 = vsel %vm737_vm0, %v417_v22, 0  ;;  %v418_v36 = vpack.c.bf16 %v372_v33, %v371_v31  ;;  %v389_v39 = vld [vmem:[%s3369_s24 + $0x1a0] sm:$0xff]  ;;  %v390_v40 = vld [vmem:[%s3369_s24 + $0x1a8] sm:$0xff]  ;;  %v411_v43 = vpack.c.bf16 %v358_v38, %v357_v37  ;;  %v359_v53 = vld [vmem:[%s3369_s24 + $0xb0] sm:$0xff] }
  0x26   : > { %2703 = vmatpush3.bf16.xpose.msra.mxu1 %v835_v32  ;;  %2751 = vmatprep.subr.msk.bf16.mxu0 %vm737_vm0, %v410_v27  ;;  %v790_v42 = vsel %vm737_vm0, %v402_v34, 0  ;;  %v427_v45 = vpack.c.bf16 %v390_v40, %v389_v39  ;;  %v341_v46 = vld [vmem:[%s3369_s24 + $0x20] sm:$0xff]  ;;  %v342_v47 = vld [vmem:[%s3369_s24 + $0x28] sm:$0xff]  ;;  %v360_v54 = vld [vmem:[%s3369_s24 + $0xb8] sm:$0xff] }
  0x27   : > { %2759 = vmatprep.subr.msk.bf16.mxu1 %vm737_vm0, %v426_v28  ;;  %529 = vperm.xlu0 %2807, %v471_v21   ;;  %v838_v44 = vsel %vm737_vm0, %v418_v36, 0  ;;  %v373_v48 = vld [vmem:[%s3369_s24 + $0x120] sm:$0xff]  ;;  %v374_v49 = vld [vmem:[%s3369_s24 + $0x128] sm:$0xff]  ;;  %v403_v51 = vpack.c.bf16 %v342_v47, %v341_v46  ;;  %v391_v55 = vld [vmem:[%s3369_s24 + $0x1b0] sm:$0xff]  ;;  %v412_v59 = vpack.c.bf16 %v360_v54, %v359_v53 }
  0x28   : > { %534 = vperm.xlu1 %2808, %v472_v35   ;;  %v419_v52 = vpack.c.bf16 %v374_v49, %v373_v48  ;;  %v392_v56 = vld [vmem:[%s3369_s24 + $0x1b8] sm:$0xff]  ;;  %v343_v62 = vld [vmem:[%s3369_s24 + $0x30] sm:$0xff]  ;;  %v361_v5 = vld [vmem:[%s3369_s24 + $0xc0] sm:$0xff] }
  0x29   : > { %v793_v58 = vsel %vm737_vm0, %v403_v51, 0  ;;  %v428_v61 = vpack.c.bf16 %v392_v56, %v391_v55  ;;  %v344_v63 = vld [vmem:[%s3369_s24 + $0x38] sm:$0xff]  ;;  %v375_v0 = vld [vmem:[%s3369_s24 + $0x130] sm:$0xff]  ;;  %v474_v6 = vld [vmem:[%s5065_s2 + $0x48] sm:$0xff] }
  0x2a   : > { %v841_v60 = vsel %vm737_vm0, %v419_v52, 0  ;;  %v376_v1 = vld [vmem:[%s3369_s24 + $0x138] sm:$0xff]  ;;  %v404_v4 = vpack.c.bf16 %v344_v63, %v343_v62  ;;  %v479_v7 = vld [vmem:[%s5065_s2 + $0x70] sm:$0xff]  ;;  %v362_v9 = vld [vmem:[%s3369_s24 + $0xc8] sm:$0xff] }
  0x2b   : > { %539 = vperm.xlu0 %2807, %v473_v41   ;;  %v420_v8 = vpack.c.bf16 %v376_v1, %v375_v0  ;;  %v393_v10 = vld [vmem:[%s3369_s24 + $0x1c0] sm:$0xff]  ;;  %v394_v11 = vld [vmem:[%s3369_s24 + $0x1c8] sm:$0xff]  ;;  %v476_v12 = vld [vmem:[%s5065_s2 + $0x58] sm:$0xff]  ;;  %v413_v15 = vpack.c.bf16 %v362_v9, %v361_v5 }
  0x2c   : > { %544 = vperm.xlu1 %2808, %v474_v6   ;;  %v481_v13 = vld [vmem:[%s5065_s2 + $0x80] sm:$0xff]  ;;  %v796_v14 = vsel %vm737_vm0, %v404_v4, 0  ;;  %v429_v18 = vpack.c.bf16 %v394_v11, %v393_v10  ;;  %v346_v19 = vld [vmem:[%s3369_s24 + $0x48] sm:$0xff]  ;;  %v483_v23 = vld [vmem:[%s5065_s2 + $0x90] sm:$0xff] }
  0x2d   : > { %2657 = vmatpush3.bf16.xpose.msra.mxu0 %v790_v42  ;;  %v345_v16 = vld [vmem:[%s3369_s24 + $0x40] sm:$0xff]  ;;  %v844_v17 = vsel %vm737_vm0, %v420_v8, 0  ;;  %v378_v21 = vld [vmem:[%s3369_s24 + $0x148] sm:$0xff]  ;;  %v363_v26 = vld [vmem:[%s3369_s24 + $0xd0] sm:$0xff] }
  0x2e   : > { %2705 = vmatpush3.bf16.xpose.msra.mxu1 %v838_v44  ;;  %2752 = vmatprep.subr.msk.bf16.mxu0 %vm737_vm0, %v411_v43  ;;  %v377_v20 = vld [vmem:[%s3369_s24 + $0x140] sm:$0xff]  ;;  %v478_v22 = vld [vmem:[%s5065_s2 + $0x68] sm:$0xff]  ;;  %v405_v24 = vpack.c.bf16 %v346_v19, %v345_v16  ;;  %v364_v27 = vld [vmem:[%s3369_s24 + $0xd8] sm:$0xff] }
  0x2f   : > { %2760 = vmatprep.subr.msk.bf16.mxu1 %vm737_vm0, %v427_v45  ;;  %549 = vperm.xlu0 %2807, %v475_v50   ;;  %v421_v25 = vpack.c.bf16 %v378_v21, %v377_v20  ;;  %v395_v28 = vld [vmem:[%s3369_s24 + $0x1d0] sm:$0xff]  ;;  %v396_v29 = vld [vmem:[%s3369_s24 + $0x1d8] sm:$0xff]  ;;  %v485_v31 = vld [vmem:[%s5065_s2 + $0xa0] sm:$0xff]  ;;  %v414_v33 = vpack.c.bf16 %v364_v27, %v363_v26 }
  0x30   : > { %554 = vperm.xlu1 %2808, %v476_v12   ;;  %v480_v30 = vld [vmem:[%s5065_s2 + $0x78] sm:$0xff]  ;;  %v799_v32 = vsel %vm737_vm0, %v405_v24, 0  ;;  %v347_v34 = vld [vmem:[%s3369_s24 + $0x50] sm:$0xff]  ;;  %v430_v38 = vpack.c.bf16 %v396_v29, %v395_v28  ;;  %v482_v40 = vld [vmem:[%s5065_s2 + $0x88] sm:$0xff] }
  0x31   : > { %v348_v35 = vld [vmem:[%s3369_s24 + $0x58] sm:$0xff]  ;;  %v379_v36 = vld [vmem:[%s3369_s24 + $0x150] sm:$0xff]  ;;  %v847_v37 = vsel %vm737_vm0, %v421_v25, 0  ;;  %v365_v44 = vld [vmem:[%s3369_s24 + $0xe0] sm:$0xff] }
  0x32   : > { %v380_v39 = vld [vmem:[%s3369_s24 + $0x158] sm:$0xff]  ;;  %v406_v41 = vpack.c.bf16 %v348_v35, %v347_v34  ;;  %v487_v42 = vld [vmem:[%s5065_s2 + $0xb0] sm:$0xff]  ;;  %v366_v45 = vld [vmem:[%s3369_s24 + $0xe8] sm:$0xff] }
  0x33   : > { %559 = vperm.xlu0 %2807, %v477_v57   ;;  %v422_v43 = vpack.c.bf16 %v380_v39, %v379_v36  ;;  %v397_v46 = vld [vmem:[%s3369_s24 + $0x1e0] sm:$0xff]  ;;  %v398_v47 = vld [vmem:[%s3369_s24 + $0x1e8] sm:$0xff]  ;;  %v484_v48 = vld [vmem:[%s5065_s2 + $0x98] sm:$0xff]  ;;  %v415_v54 = vpack.c.bf16 %v366_v45, %v365_v44 }
  0x34   : > { %564 = vperm.xlu1 %2808, %v478_v22   ;;  %v802_v49 = vsel %vm737_vm0, %v406_v41, 0  ;;  %v349_v50 = vld [vmem:[%s3369_s24 + $0x60] sm:$0xff]  ;;  %v350_v51 = vld [vmem:[%s3369_s24 + $0x68] sm:$0xff]  ;;  %v399_v0 = vld [vmem:[%s3369_s24 + $0x1f0] sm:$0xff] }
  0x35   : > { %2659 = vmatpush3.bf16.xpose.msra.mxu0 %v793_v58  ;;  %v489_v52 = vld [vmem:[%s5065_s2 + $0xc0] sm:$0xff]  ;;  %v850_v53 = vsel %vm737_vm0, %v422_v43, 0  ;;  %v382_v56 = vld [vmem:[%s3369_s24 + $0x168] sm:$0xff]  ;;  %v431_v58 = vpack.c.bf16 %v398_v47, %v397_v46  ;;  %v407_v62 = vpack.c.bf16 %v350_v51, %v349_v50  ;;  %v400_v1 = vld [vmem:[%s3369_s24 + $0x1f8] sm:$0xff] }
  0x36   : > { %2707 = vmatpush3.bf16.xpose.msra.mxu1 %v841_v60  ;;  %2753 = vmatprep.subr.msk.bf16.mxu0 %vm737_vm0, %v412_v59  ;;  %v381_v55 = vld [vmem:[%s3369_s24 + $0x160] sm:$0xff]  ;;  %v486_v57 = vld [vmem:[%s5065_s2 + $0xa8] sm:$0xff]  ;;  %v367_v59 = vld [vmem:[%s3369_s24 + $0xf0] sm:$0xff]  ;;  %v432_v9 = vpack.c.bf16 %v400_v1, %v399_v0 }
  0x37   : > { %2761 = vmatprep.subr.msk.bf16.mxu1 %vm737_vm0, %v428_v61  ;;  %569 = vperm.xlu0 %2807, %v479_v7   ;;  %v368_v60 = vld [vmem:[%s3369_s24 + $0xf8] sm:$0xff]  ;;  %v491_v61 = vld [vmem:[%s5065_s2 + $0xd0] sm:$0xff]  ;;  %v423_v63 = vpack.c.bf16 %v382_v56, %v381_v55  ;;  %v493_v5 = vld [vmem:[%s5065_s2 + $0xe0] sm:$0xff]  ;;  %v805_v6 = vsel %vm737_vm0, %v407_v62, 0 }
  0x38   : > { %574 = vperm.xlu1 %2808, %v480_v30   ;;  %v488_v4 = vld [vmem:[%s5065_s2 + $0xb8] sm:$0xff]  ;;  %v416_v7 = vpack.c.bf16 %v368_v60, %v367_v59  ;;  %v351_v10 = vld [vmem:[%s3369_s24 + $0x70] sm:$0xff]  ;;  %v1852_v19 = vld [vmem:[%s5067_s4] sm:$0xff] }
  0x39   : > { %v853_v8 = vsel %vm737_vm0, %v423_v63, 0  ;;  %v352_v11 = vld [vmem:[%s3369_s24 + $0x78] sm:$0xff]  ;;  %v383_v12 = vld [vmem:[%s3369_s24 + $0x170] sm:$0xff]  ;;  %v494_v22 = vld [vmem:[%s5065_s2 + $0xe8] sm:$0xff] }
  0x3a   : > { %v408_v16 = vpack.c.bf16 %v352_v11, %v351_v10  ;;  %v496_v24 = vld [vmem:[%s5065_s2 + $0xf8] sm:$0xff]  ;;  %v2810_v25 = vld [vmem:[%s5064_s1 + $0x8] sm:$0xff]   ;;  %v1856_v26 = vld [vmem:[%s5067_s4 + $0x20] sm:$0xff] }
  0x3b   : > { %579 = vperm.xlu0 %2807, %v481_v13   ;;  %v384_v13 = vld [vmem:[%s3369_s24 + $0x178] sm:$0xff]  ;;  %v1853_v27 = vld [vmem:[%s5067_s4 + $0x8] sm:$0xff]  ;;  %v1858_v28 = vld [vmem:[%s5067_s4 + $0x30] sm:$0xff]  ;;  %s328_s24 = scalar_lea.vmem [#allocation3], %s2584_s26 }
  0x3c   : > { %584 = vperm.xlu1 %2808, %v482_v40   ;;  %v808_v20 = vsel %vm737_vm0, %v408_v16, 0  ;;  %v1855_v29 = vld [vmem:[%s5067_s4 + $0x18] sm:$0xff]  ;;  %v2811_v30 = vld [vmem:[%s5064_s1 + $0x10] sm:$0xff]   ;;  %v2233_v35 = vld [vmem:[%s5069_s6 + $0x8] sm:$0xff]  ;;  %s2521_s27 = sshll.u32 %s328_s24, 4  ;;  %s5023_s27 = int_to_ptr.vmem [resolvable:$true] %s2521_s27 }
  0x3d   : > { %2661 = vmatpush3.bf16.xpose.msra.mxu0 %v796_v14  ;;  %v490_v14 = vld [vmem:[%s5065_s2 + $0xc8] sm:$0xff]  ;;  %v2812_v34 = vld [vmem:[%s5064_s1 + $0x18] sm:$0xff]   ;;  %v2813_v36 = vld [vmem:[%s5064_s1 + $0x20] sm:$0xff]   ;;  %s3174_s8 = scalar_lea.vmem %s5023_s27, 64  ;;  %p3181_p0 = scmp.lt.s32.totalorder %s5023_s27, %s3179_s17 }
  0x3e   : > { %2709 = vmatpush3.bf16.xpose.msra.mxu1 %v844_v17  ;;  %2754 = vmatprep.subr.msk.bf16.mxu0 %vm737_vm0, %v413_v15  ;;  %v495_v15 = vld [vmem:[%s5065_s2 + $0xf0] sm:$0xff]  ;;  %v424_v17 = vpack.c.bf16 %v384_v13, %v383_v12  ;;  %v2816_v39 = vld [vmem:[%s5064_s1 + $0x38] sm:$0xff]   ;;  %v2817_v40 = vld [vmem:[%s5064_s1 + $0x40] sm:$0xff]   ;;  %p3175_p11 = scmp.ne.s32.totalorder %s5023_s27, %s3174_s8  ;;  %p3182_p1 = scmp.lt.s32.totalorder %s3180_s18, %s3174_s8 }
  0x3f   : > { %2762 = vmatprep.subr.msk.bf16.mxu1 %vm737_vm0, %v429_v18  ;;  %589 = vperm.xlu0 %2807, %v483_v23   ;;  %v492_v18 = vld [vmem:[%s5065_s2 + $0xd8] sm:$0xff]  ;;  %v1854_v23 = vld [vmem:[%s5067_s4 + $0x10] sm:$0xff]  ;;  %v2818_v41 = vld [vmem:[%s5064_s1 + $0x48] sm:$0xff]  }
  0x40   : > { %594 = vperm.xlu1 %2808, %v484_v48   ;;  %v856_v21 = vsel %vm737_vm0, %v424_v17, 0  ;;  %v2820_v43 = vld [vmem:[%s5064_s1 + $0x58] sm:$0xff]   ;;  %v2821_v44 = vld [vmem:[%s5064_s1 + $0x60] sm:$0xff]   ;;  %v2822_v45 = vld [vmem:[%s5064_s1 + $0x68] sm:$0xff]   ;;  %p3176_p12 = pnand %p3175_p11, %p3329_p5  ;;  %p3183_p2 = por %p3182_p1, %p3181_p0 }
  0x41   : > { %v2823_v46 = vld [vmem:[%s5064_s1 + $0x70] sm:$0xff]   ;;  %v2824_v47 = vld [vmem:[%s5064_s1 + $0x78] sm:$0xff]  }
  0x42   : > { %p3177_p13 = pneg %p3176_p12 }
  0x43   : > { %599 = vperm.xlu0 %2807, %v485_v31   ;;  %v1857_v31 = vld [vmem:[%s5067_s4 + $0x28] sm:$0xff] }
  0x44   : > { %604 = vperm.xlu1 %2808, %v486_v57   ;;  %p3184_p3 = pnand %p3183_p2, %p3177_p13 }
  0x45   : > { %2663 = vmatpush3.bf16.xpose.msra.mxu0 %v799_v32  ;;  %v2376_v32 = vld [vmem:[#allocation2] sm:$0x1] }
  0x46   : > { %2711 = vmatpush3.bf16.xpose.msra.mxu1 %v847_v37  ;;  %2755 = vmatprep.subr.msk.bf16.mxu0 %vm737_vm0, %v414_v33  ;;  %v1859_v33 = vld [vmem:[%s5067_s4 + $0x38] sm:$0xff]  ;;  %v2814_v37 = vld [vmem:[%s5064_s1 + $0x28] sm:$0xff]  }
  0x47   : > { %2763 = vmatprep.subr.msk.bf16.mxu1 %vm737_vm0, %v430_v38  ;;  %609 = vperm.xlu0 %2807, %v487_v42   ;;  %v2815_v38 = vld [vmem:[%s5064_s1 + $0x30] sm:$0xff]  }
  0x48   : > { %614 = vperm.xlu1 %2808, %v488_v4   ;;  %v2819_v42 = vld [vmem:[%s5064_s1 + $0x50] sm:$0xff]  }
  0x4b   : > { %619 = vperm.xlu0 %2807, %v489_v52  }
  0x4c   : > { %624 = vperm.xlu1 %2808, %v490_v14  }
  0x4d   : > { %2665 = vmatpush3.bf16.xpose.msra.mxu0 %v802_v49 }
  0x4e   : > { %2713 = vmatpush3.bf16.xpose.msra.mxu1 %v850_v53  ;;  %2756 = vmatprep.subr.msk.bf16.mxu0 %vm737_vm0, %v415_v54 }
  0x4f   : > { %2764 = vmatprep.subr.msk.bf16.mxu1 %vm737_vm0, %v431_v58  ;;  %629 = vperm.xlu0 %2807, %v491_v61  }
  0x50   : > { %634 = vperm.xlu1 %2808, %v492_v18  }
  0x53   : > { %639 = vperm.xlu0 %2807, %v493_v5  }
  0x54   : > { %644 = vperm.xlu1 %2808, %v494_v22  }
  0x55   : > { %2667 = vmatpush3.bf16.xpose.msra.mxu0 %v805_v6 }
  0x56   : > { %2715 = vmatpush3.bf16.xpose.msra.mxu1 %v853_v8  ;;  %2757 = vmatprep.subr.msk.bf16.mxu0 %vm737_vm0, %v416_v7 }
  0x57   : > { %2765 = vmatprep.subr.msk.bf16.mxu1 %vm737_vm0, %v432_v9  ;;  %649 = vperm.xlu0 %2807, %v495_v15  }
  0x58   : > { %654 = vperm.xlu1 %2808, %v496_v24  }
  0x5b   : > { %1862 = vperm.xlu0 %2807, %v1852_v19  }
  0x5c   : > { %1867 = vperm.xlu1 %2808, %v1853_v27  }
  0x5d   : > { %2669 = vmatpush3.bf16.xpose.msra.mxu0 %v808_v20 }
  0x5e   : > { %2717 = vmatpush3.bf16.xpose.msra.mxu1 %v856_v21 }
  0x5f   : > { %1872 = vperm.xlu0 %2807, %v1854_v23  }
  0x60   : > { %1877 = vperm.xlu1 %2808, %v1855_v29  }
  0x63   : > { %1882 = vperm.xlu0 %2807, %v1856_v26  }
  0x64   : > { %2671 = vmatmul.mubr.msk.bf16.vlgmr.msra.gmra.mrb[0].mxu0 %vm737_vm0, %v3349_v3  ;;  %1887 = vperm.xlu1 %2808, %v1857_v31  }
  0x65   : > { %2719 = vmatmul.mubr.msk.bf16.vlgmr.msra.gmra.mrb[0].mxu1 %vm737_vm0, %v3349_v3  ;;  %2672 = vmatprep.mubr.msk.bf16.mxu0 %vm737_vm0, %v2810_v25  ;;  %v2232_v3 = vld [vmem:[%s5069_s6] sm:$0xff] }
  0x66   : > { %2720 = vmatprep.mubr.msk.bf16.mxu1 %vm737_vm0, %v2810_v25 }
  0x67   : > { %1892 = vperm.xlu0 %2807, %v1858_v28  }
  0x68   : > { %1897 = vperm.xlu1 %2808, %v1859_v33  }
  0x6b   : > { %2236 = vperm.xlu0 %2807, %v2232_v3  }
  0x6c   : > { %2673 = vmatmul.mubr.msk.bf16.gmra.mrb[4].mxu0 %vm737_vm0, %v2810_v25  ;;  %2241 = vperm.xlu1 %2808, %v2233_v35  }
  0x6d   : > { %2721 = vmatmul.mubr.msk.bf16.gmra.mrb[4].mxu1 %vm737_vm0, %v2810_v25  ;;  %2674 = vmatprep.mubr.msk.bf16.mxu0 %vm737_vm0, %v2811_v30 }
  0x6e   : > { %2722 = vmatprep.mubr.msk.bf16.mxu1 %vm737_vm0, %v2811_v30 }
  0x6f   : > { %2379 = vperm.xlu0 %2807, %v2376_v32  }
  0x74   : > { %2675 = vmatmul.mubr.msk.bf16.gmra.mrb[8].mxu0 %vm737_vm0, %v2811_v30 }
  0x75   : > { %2723 = vmatmul.mubr.msk.bf16.gmra.mrb[8].mxu1 %vm737_vm0, %v2811_v30  ;;  %2676 = vmatprep.mubr.msk.bf16.mxu0 %vm737_vm0, %v2812_v34 }
  0x76   : > { %2724 = vmatprep.mubr.msk.bf16.mxu1 %vm737_vm0, %v2812_v34 }
  0x7c   : > { %2677 = vmatmul.mubr.msk.bf16.gmra.mrb[12].mxu0 %vm737_vm0, %v2812_v34 }
  0x7d   : > { %2725 = vmatmul.mubr.msk.bf16.gmra.mrb[12].mxu1 %vm737_vm0, %v2812_v34  ;;  %2678 = vmatprep.mubr.msk.bf16.mxu0 %vm737_vm0, %v2813_v36 }
  0x7e   : > { %2726 = vmatprep.mubr.msk.bf16.mxu1 %vm737_vm0, %v2813_v36 }
  0x84   : > { %2679 = vmatmul.mubr.msk.bf16.gmra.mrb[16].mxu0 %vm737_vm0, %v2813_v36 }
  0x85   : > { %2727 = vmatmul.mubr.msk.bf16.gmra.mrb[16].mxu1 %vm737_vm0, %v2813_v36  ;;  %2680 = vmatprep.mubr.msk.bf16.mxu0 %vm737_vm0, %v2814_v37 }
  0x86   : > { %2728 = vmatprep.mubr.msk.bf16.mxu1 %vm737_vm0, %v2814_v37 }
  0x8c   : > { %2681 = vmatmul.mubr.msk.bf16.gmra.mrb[20].mxu0 %vm737_vm0, %v2814_v37 }
  0x8d   : > { %2729 = vmatmul.mubr.msk.bf16.gmra.mrb[20].mxu1 %vm737_vm0, %v2814_v37  ;;  %2682 = vmatprep.mubr.msk.bf16.mxu0 %vm737_vm0, %v2815_v38 }
  0x8e   : > { %2730 = vmatprep.mubr.msk.bf16.mxu1 %vm737_vm0, %v2815_v38 }
  0x94   : > { %2683 = vmatmul.mubr.msk.bf16.gmra.mrb[24].mxu0 %vm737_vm0, %v2815_v38 }
  0x95   : > { %2731 = vmatmul.mubr.msk.bf16.gmra.mrb[24].mxu1 %vm737_vm0, %v2815_v38  ;;  %2684 = vmatprep.mubr.msk.bf16.mxu0 %vm737_vm0, %v2816_v39 }
  0x96   : > { %2732 = vmatprep.mubr.msk.bf16.mxu1 %vm737_vm0, %v2816_v39 }
  0x99   : > { %v500_v48 = vpop.permute.xlu0 %499 }
  0x9a   : > { %v510_v49 = vpop.permute.xlu1 %509 }
  0x9c   : > { %2685 = vmatmul.mubr.msk.bf16.gmra.mrb[28].mxu0 %vm737_vm0, %v2816_v39 }
  0x9d   : > { %2733 = vmatmul.mubr.msk.bf16.gmra.mrb[28].mxu1 %vm737_vm0, %v2816_v39  ;;  %2686 = vmatprep.mubr.msk.bf16.mxu0 %vm737_vm0, %v2817_v40  ;;  %v505_v50 = vpop.permute.xlu0 %504 }
  0x9e   : > { %2734 = vmatprep.mubr.msk.bf16.mxu1 %vm737_vm0, %v2817_v40  ;;  %v515_v12 = vpop.permute.xlu1 %514 }
  0xa1   : > { %v520_v38 = vpop.permute.xlu0 %519 }
  0xa4   : > { %2687 = vmatmul.mubr.msk.bf16.gmra.mrb[32].mxu0 %vm737_vm0, %v2817_v40 }
  0xa5   : > { %2735 = vmatmul.mubr.msk.bf16.gmra.mrb[32].mxu1 %vm737_vm0, %v2817_v40  ;;  %2688 = vmatprep.mubr.msk.bf16.mxu0 %vm737_vm0, %v2818_v41 }
  0xa6   : > { %2736 = vmatprep.mubr.msk.bf16.mxu1 %vm737_vm0, %v2818_v41 }
  0xac   : > { %2689 = vmatmul.mubr.msk.bf16.gmra.mrb[36].mxu0 %vm737_vm0, %v2818_v41 }
  0xad   : > { %2737 = vmatmul.mubr.msk.bf16.gmra.mrb[36].mxu1 %vm737_vm0, %v2818_v41  ;;  %2690 = vmatprep.mubr.msk.bf16.mxu0 %vm737_vm0, %v2819_v42 }
  0xae   : > { %2738 = vmatprep.mubr.msk.bf16.mxu1 %vm737_vm0, %v2819_v42 }
  0xb4   : > { %2691 = vmatmul.mubr.msk.bf16.gmra.mrb[40].mxu0 %vm737_vm0, %v2819_v42 }
  0xb5   : > { %2739 = vmatmul.mubr.msk.bf16.gmra.mrb[40].mxu1 %vm737_vm0, %v2819_v42  ;;  %2692 = vmatprep.mubr.msk.bf16.mxu0 %vm737_vm0, %v2820_v43 }
  0xb6   : > { %2740 = vmatprep.mubr.msk.bf16.mxu1 %vm737_vm0, %v2820_v43 }
  0xbc   : > { %2693 = vmatmul.mubr.msk.bf16.gmra.mrb[44].mxu0 %vm737_vm0, %v2820_v43 }
  0xbd   : > { %2741 = vmatmul.mubr.msk.bf16.gmra.mrb[44].mxu1 %vm737_vm0, %v2820_v43  ;;  %2694 = vmatprep.mubr.msk.bf16.mxu0 %vm737_vm0, %v2821_v44 }
  0xbe   : > { %2742 = vmatprep.mubr.msk.bf16.mxu1 %vm737_vm0, %v2821_v44 }
  0xc4   : > { %2695 = vmatmul.mubr.msk.bf16.gmra.mrb[48].mxu0 %vm737_vm0, %v2821_v44 }
  0xc5   : > { %2743 = vmatmul.mubr.msk.bf16.gmra.mrb[48].mxu1 %vm737_vm0, %v2821_v44  ;;  %2696 = vmatprep.mubr.msk.bf16.mxu0 %vm737_vm0, %v2822_v45 }
  0xc6   : > { %2744 = vmatprep.mubr.msk.bf16.mxu1 %vm737_vm0, %v2822_v45 }
  0xcc   : > { %2697 = vmatmul.mubr.msk.bf16.gmra.mrb[52].mxu0 %vm737_vm0, %v2822_v45 }
  0xcd   : > { %2745 = vmatmul.mubr.msk.bf16.gmra.mrb[52].mxu1 %vm737_vm0, %v2822_v45  ;;  %2698 = vmatprep.mubr.msk.bf16.mxu0 %vm737_vm0, %v2823_v46 }
  0xce   : > { %2746 = vmatprep.mubr.msk.bf16.mxu1 %vm737_vm0, %v2823_v46 }
  0xd4   : > { %2699 = vmatmul.mubr.msk.bf16.gmra.mrb[56].mxu0 %vm737_vm0, %v2823_v46 }
  0xd5   : > { %2747 = vmatmul.mubr.msk.bf16.gmra.mrb[56].mxu1 %vm737_vm0, %v2823_v46  ;;  %2700 = vmatprep.mubr.msk.bf16.mxu0 %vm737_vm0, %v2824_v47 }
  0xd6   : > { %2748 = vmatprep.mubr.msk.bf16.mxu1 %vm737_vm0, %v2824_v47 }
  0xdc   : > { %2701 = vmatmul.mubr.msk.bf16.gmra.mrb[60].mxu0 %vm737_vm0, %v2824_v47 }
  0xdd   : > { %2749 = vmatmul.mubr.msk.bf16.gmra.mrb[60].mxu1 %vm737_vm0, %v2824_v47 }
 0x137   : > { %v916_v51 = vpop.f32.mrb[0].mxu0 }
 0x138   : > { %v917_v52 = vadd.f32 %v916_v51, %v500_v48  ;;  %v1109_v53 = vpop.f32.mrb[0].mxu1  ;;  %v918_v54 = vpop.f32.mrb[1].mxu0 }
 0x139   : > { %v1110_v55 = vadd.f32 %v1109_v53, %v500_v48  ;;  %v919_v56 = vadd.f32 %v918_v54, %v500_v48  ;;  %v1111_v57 = vpop.f32.mrb[1].mxu1  ;;  %v920_v58 = vpop.f32.mrb[2].mxu0 }
 0x13a   : > { %v3690_v59 = vmul.f32 0.5, %v917_v52  ;;  %v1112_v60 = vadd.f32 %v1111_v57, %v500_v48  ;;  %v921_v61 = vadd.f32 %v920_v58, %v505_v50  ;;  %v1113_v62 = vpop.f32.mrb[2].mxu1  ;;  %v922_v63 = vpop.f32.mrb[3].mxu0 }
 0x13b   : > { %v3692_v0 = vmul.f32 0.5, %v1110_v55  ;;  %v3694_v1 = vmul.f32 0.5, %v919_v56  ;;  %v1114_v4 = vadd.f32 %v1113_v62, %v505_v50  ;;  %v923_v5 = vadd.f32 %v922_v63, %v505_v50  ;;  %v1115_v6 = vpop.f32.mrb[3].mxu1 }
 0x13c   : > { %2838 = vtanh.f32 %v3690_v59  ;;  %v3697_v7 = vmul.f32 0.5, %v1112_v60  ;;  %v3699_v8 = vmul.f32 0.5, %v921_v61  ;;  %v1116_v9 = vadd.f32 %v1115_v6, %v505_v50  ;;  %v525_v6 = vpop.permute.xlu1 %524 }
 0x13d   : > { %2840 = vtanh.f32 %v3692_v0  ;;  %v3702_v10 = vmul.f32 0.5, %v1114_v4  ;;  %v3705_v11 = vmul.f32 0.5, %v923_v5 }
 0x13e   : > { %2842 = vtanh.f32 %v3694_v1  ;;  %v3708_v13 = vmul.f32 0.5, %v1116_v9 }
 0x13f   : > { %2844 = vtanh.f32 %v3697_v7  ;;  %v926_v14 = vpop.f32.mrb[4].mxu0 }
 0x140   : > { %2846 = vtanh.f32 %v3699_v8  ;;  %v927_v15 = vadd.f32 %v926_v14, %v510_v49  ;;  %v1119_v16 = vpop.f32.mrb[4].mxu1  ;;  %v928_v17 = vpop.f32.mrb[5].mxu0 }
 0x141   : > { %2848 = vtanh.f32 %v3702_v10  ;;  %v1120_v18 = vadd.f32 %v1119_v16, %v510_v49  ;;  %v929_v19 = vadd.f32 %v928_v17, %v510_v49  ;;  %v1121_v20 = vpop.f32.mrb[5].mxu1  ;;  %v930_v21 = vpop.f32.mrb[6].mxu0 }
 0x142   : > { %2850 = vtanh.f32 %v3705_v11  ;;  %v3713_v22 = vmul.f32 0.5, %v927_v15  ;;  %v1122_v23 = vadd.f32 %v1121_v20, %v510_v49  ;;  %v931_v24 = vadd.f32 %v930_v21, %v515_v12  ;;  %v1123_v25 = vpop.f32.mrb[6].mxu1  ;;  %v932_v26 = vpop.f32.mrb[7].mxu0 }
 0x143   : > { %2852 = vtanh.f32 %v3708_v13  ;;  %v3716_v27 = vmul.f32 0.5, %v1120_v18  ;;  %v3718_v28 = vmul.f32 0.5, %v929_v19  ;;  %v1124_v29 = vadd.f32 %v1123_v25, %v515_v12  ;;  %v1125_v30 = vpop.f32.mrb[7].mxu1 }
 0x144   : > { %2854 = vtanh.f32 %v3713_v22  ;;  %v3721_v3 = vmul.f32 0.5, %v1122_v23  ;;  %v3723_v31 = vmul.f32 0.5, %v931_v24  ;;  %v933_v32 = vadd.f32 %v932_v26, %v515_v12 }
 0x145   : > { %2856 = vtanh.f32 %v3716_v27  ;;  %v3726_v33 = vmul.f32 0.5, %v1124_v29  ;;  %v1126_v34 = vadd.f32 %v1125_v30, %v515_v12 }
 0x146   : > { %v2839_v35 = vpop.eup %2838  ;;  %2858 = vtanh.f32 %v3718_v28  ;;  %v3729_v36 = vmul.f32 0.5, %v933_v32 }
 0x147   : > { %v2841_v37 = vpop.eup %2840  ;;  %v1524_v39 = vadd.f32 1.0, %v2839_v35  ;;  %2860 = vtanh.f32 %v3721_v3  ;;  %v3732_v40 = vmul.f32 0.5, %v1126_v34  ;;  %v936_v41 = vpop.f32.mrb[8].mxu0 }
 0x148   : > { %v2843_v42 = vpop.eup %2842  ;;  %2862 = vtanh.f32 %v3723_v31  ;;  %v937_v43 = vadd.f32 %v936_v41, %v520_v38  ;;  %v1129_v44 = vpop.f32.mrb[8].mxu1  ;;  %v1526_v47 = vadd.f32 1.0, %v2841_v37 }
 0x149   : > { %v938_v45 = vpop.f32.mrb[9].mxu0  ;;  %v2845_v46 = vpop.eup %2844  ;;  %2864 = vtanh.f32 %v3726_v33  ;;  %v1130_v48 = vadd.f32 %v1129_v44, %v520_v38  ;;  %v3740_v56 = vmul.f32 %v1524_v39, %v3690_v59  ;;  %v1525_v57 = vadd.f32 1.0, %v2843_v42 }
 0x14a   : > { %v1131_v49 = vpop.f32.mrb[9].mxu1  ;;  %v940_v50 = vpop.f32.mrb[10].mxu0  ;;  %2866 = vtanh.f32 %v3729_v36  ;;  %v3737_v52 = vmul.f32 0.5, %v937_v43  ;;  %v939_v4 = vadd.f32 %v938_v45, %v520_v38  ;;  %v3747_v9 = vmul.f32 %v1526_v47, %v3692_v0 }
 0x14b   : > { %v2847_v51 = vpop.eup %2846  ;;  %v1133_v53 = vpop.f32.mrb[10].mxu1  ;;  %2868 = vtanh.f32 %v3732_v40  ;;  %v3744_v63 = vmul.f32 0.5, %v1130_v48  ;;  %v1132_v14 = vadd.f32 %v1131_v49, %v520_v38  ;;  %v941_v19 = vadd.f32 %v940_v50, %v525_v6 }
 0x14c   : > { %v942_v54 = vpop.f32.mrb[11].mxu0  ;;  %v2849_v55 = vpop.eup %2848  ;;  %v1528_v58 = vadd.f32 1.0, %v2847_v51  ;;  %2870 = vtanh.f32 %v3737_v52  ;;  %v3755_v18 = vmul.f32 0.5, %v939_v4  ;;  %v1527_v25 = vadd.f32 1.0, %v2845_v46 }
 0x14d   : > { %v1135_v60 = vpop.f32.mrb[11].mxu1  ;;  %v2851_v61 = vpop.eup %2850  ;;  %v1530_v62 = vadd.f32 1.0, %v2849_v55  ;;  %2872 = vtanh.f32 %v3744_v63  ;;  %v3771_v35 = vmul.f32 0.5, %v1132_v14  ;;  %v3773_v37 = vmul.f32 0.5, %v941_v19 }
 0x14e   : > { %v2853_v5 = vpop.eup %2852  ;;  %v3750_v59 = vmul.f32 %v1528_v58, %v3699_v8  ;;  %v1529_v12 = vadd.f32 1.0, %v2851_v61  ;;  %v3760_v8 = vmul.f32 %v1525_v57, %v3694_v1  ;;  %2874 = vtanh.f32 %v3755_v18  ;;  %v530_v50 = vpop.permute.xlu0 %529 }
 0x14f   : > { %v2855_v15 = vpop.eup %2854  ;;  %v3753_v16 = vmul.f32 %v1530_v62, %v3702_v10  ;;  %v1531_v17 = vadd.f32 1.0, %v2853_v5  ;;  %v946_v0 = vpop.f32.mrb[12].mxu0  ;;  %v1134_v42 = vadd.f32 %v1133_v53, %v525_v6  ;;  %v943_v43 = vadd.f32 %v942_v54, %v525_v6 }
 0x150   : > { %v2857_v20 = vpop.eup %2856  ;;  %v1780_v21 = vpack.c.bf16 %v3750_v59, %v3740_v56  ;;  %v1532_v23 = vadd.f32 1.0, %v2855_v15  ;;  %v1139_v10 = vpop.f32.mrb[12].mxu1  ;;  %v3766_v32 = vmul.f32 %v1529_v12, %v3705_v11  ;;  %2876 = vtanh.f32 %v3773_v37 }
 0x151   : > { %v2859_v24 = vpop.eup %2858  ;;  %v1782_v26 = vpack.c.bf16 %v3753_v16, %v3747_v9  ;;  %v948_v29 = vpop.f32.mrb[13].mxu0  ;;  %v3769_v34 = vmul.f32 %v1531_v17, %v3708_v13  ;;  %v1534_v41 = vadd.f32 1.0, %v2857_v20  ;;  %v1136_v47 = vadd.f32 %v1135_v60, %v525_v6 }
 0x152   : > { %v2861_v30 = vpop.eup %2860  ;;  %v1141_v1 = vpop.f32.mrb[13].mxu1  ;;  %v3779_v46 = vmul.f32 %v1532_v23, %v3713_v22  ;;  %v1533_v51 = vadd.f32 1.0, %v2859_v24  ;;  %v3784_v57 = vmul.f32 0.5, %v1134_v42  ;;  %v3786_v53 = vmul.f32 0.5, %v943_v43 }
 0x153   : > { %v950_v38 = vpop.f32.mrb[14].mxu0  ;;  %v2863_v39 = vpop.eup %2862  ;;  %2878 = vtanh.f32 %v3771_v35  ;;  %v3792_v22 = vmul.f32 0.5, %v1136_v47  ;;  %v947_v61 = vadd.f32 %v946_v0, %v530_v50  ;;  %v3795_v62 = vmul.f32 %v1534_v41, %v3716_v27 }
 0x154   : > { %v1143_v44 = vpop.f32.mrb[14].mxu1  ;;  %v3776_v45 = vpop.f32.mrb[15].mxu0  ;;  %v1536_v13 = vadd.f32 1.0, %v2863_v39  ;;  %2880 = vtanh.f32 %v3784_v57  ;;  %v1140_v5 = vadd.f32 %v1139_v10, %v530_v50  ;;  %v1655_v12 = vmul.f32 %v1527_v25, %v3697_v7 }
 0x155   : > { %v2865_v11 = vpop.eup %2864  ;;  %v3782_v48 = vpop.f32.mrb[15].mxu1  ;;  %2882 = vtanh.f32 %v3786_v53  ;;  %v3808_v0 = vmul.f32 0.5, %v947_v61  ;;  %v949_v24 = vadd.f32 %v948_v29, %v530_v50  ;;  %v3817_v39 = vmul.f32 %v1533_v51, %v3718_v28 }
 0x156   : > { %v2867_v49 = vpop.eup %2866  ;;  %v1538_v55 = vadd.f32 1.0, %v2865_v11  ;;  %v3789_v58 = vmul.f32 %v1536_v13, %v3723_v31  ;;  %v535_v6 = vpop.permute.xlu1 %534  ;;  %v1535_v31 = vadd.f32 1.0, %v2861_v30  ;;  %2884 = vtanh.f32 %v3792_v22 }
 0x157   : > { %v2869_v54 = vpop.eup %2868  ;;  %v956_v15 = vpop.f32.mrb[16].mxu0  ;;  %v1537_v17 = vadd.f32 1.0, %v2867_v49  ;;  %v3810_v7 = vmul.f32 0.5, %v1140_v5  ;;  %v1142_v41 = vadd.f32 %v1141_v1, %v530_v50  ;;  %v1781_v42 = vpack.c.bf16 %v3766_v32, %v3760_v8 }
 0x158   : > { %v2871_v60 = vpop.eup %2870  ;;  %v3798_v4 = vmul.f32 %v1538_v55, %v3726_v33  ;;  %v1784_v14 = vpack.c.bf16 %v3789_v58, %v3779_v46  ;;  %v1539_v19 = vadd.f32 1.0, %v2869_v54  ;;  %v1149_v33 = vpop.f32.mrb[16].mxu1  ;;  %v1783_v43 = vpack.c.bf16 %v3769_v34, %v1655_v12 }
 0x159   : > { %v958_v20 = vpop.f32.mrb[17].mxu0  ;;  %v1540_v23 = vadd.f32 1.0, %v2871_v60  ;;  %v3812_v25 = vpop.f32.mrb[17].mxu1  ;;  %v3827_v29 = vmul.f32 %v1535_v31, %v3721_v3  ;;  %2886 = vtanh.f32 %v3808_v0  ;;  %v3830_v47 = vmul.f32 0.5, %v949_v24  ;;  %1940 = vmatprep.subr.bf16.mxu0 %v1781_v42 }
 0x15a   : > { %v1786_v27 = vpack.c.bf16 %v3798_v4, %v3795_v62  ;;  %v3814_v10 = vpop.f32.mrb[18].mxu0  ;;  %v2873_v30 = vpop.eup %2872  ;;  %v951_v49 = vadd.f32 %v950_v38, %v535_v6  ;;  %v3837_v8 = vmul.f32 %v1537_v17, %v3729_v36  ;;  %v3840_v32 = vmul.f32 %v1539_v19, %v3732_v40  ;;  %2013 = vmatprep.subr.bf16.mxu1 %v1783_v43 }
 0x15b   : > { %v3822_v11 = vpop.f32.mrb[18].mxu1  ;;  %v3824_v13 = vpop.f32.mrb[19].mxu0  ;;  %2888 = vtanh.f32 %v3810_v7  ;;  %v1144_v3 = vadd.f32 %v1143_v44, %v535_v6  ;;  %v3844_v50 = vmul.f32 %v1540_v23, %v3737_v52  ;;  %v1542_v38 = vadd.f32 1.0, %v2873_v30  ;;  %1941 = vmatpush1.bf16.msra.mxu0 %v1780_v21  ;;  %2014 = vmatpush1.bf16.msra.mxu1 %v1782_v26 }
 0x15c   : > { %v3832_v28 = vpop.f32.mrb[19].mxu1  ;;  %v3834_v1 = vpop.eup %2874  ;;  %v3846_v51 = vmul.f32 0.5, %v951_v49  ;;  %v953_v36 = vadd.f32 %v3776_v45, %v535_v6  ;;  %2890 = vtanh.f32 %v3830_v47  ;;  %v3856_v44 = vmul.f32 0.5, %v1142_v41 }
 0x15d   : > { %v2877_v34 = vpop.eup %2876  ;;  %v540_v40 = vpop.permute.xlu0 %539  ;;  %v3858_v52 = vmul.f32 0.5, %v1144_v3  ;;  %v1146_v56 = vadd.f32 %v3782_v48, %v535_v6  ;;  %v3895_v30 = vmul.f32 %v1542_v38, %v3744_v63  ;;  %v1785_v3 = vpack.c.bf16 %v3837_v8, %v3817_v39 }
 0x15e   : > { %v1544_v55 = vadd.f32 1.0, %v2877_v34  ;;  %v2879_v54 = vpop.eup %2878  ;;  %2892 = vtanh.f32 %v3846_v51  ;;  %v3861_v61 = vmul.f32 0.5, %v953_v36  ;;  %v957_v59 = vadd.f32 %v956_v15, %v540_v40  ;;  %v545_v38 = vpop.permute.xlu1 %544 }
 0x15f   : > { %v3864_v9 = vpop.f32.mrb[20].mxu0  ;;  %v2881_v16 = vpop.eup %2880  ;;  %2894 = vtanh.f32 %v3858_v52  ;;  %v1150_v26 = vadd.f32 %v1149_v33, %v540_v40  ;;  %v959_v45 = vadd.f32 %v958_v20, %v540_v40  ;;  %v3875_v48 = vmul.f32 0.5, %v1146_v56  ;;  %1942 = vmatprep.subr.bf16.mxu0 %v1785_v3 }
 0x160   : > { %v3867_v21 = vmul.f32 %v1544_v55, %v3773_v37  ;;  %v3870_v60 = vpop.f32.mrb[20].mxu1  ;;  %v3872_v5 = vpop.f32.mrb[21].mxu0  ;;  %v1546_v31 = vadd.f32 1.0, %v2881_v16  ;;  %2896 = vtanh.f32 %v3861_v61  ;;  %v3877_v6 = vmul.f32 0.5, %v957_v59  ;;  %1943 = vmatpush1.bf16.msra.mxu0 %v1784_v14 }
 0x161   : > { %v2883_v12 = vpop.eup %2882  ;;  %v3879_v15 = vpop.f32.mrb[21].mxu1  ;;  %2898 = vtanh.f32 %v3856_v44  ;;  %v3886_v33 = vmul.f32 0.5, %v1150_v26  ;;  %v3888_v20 = vmul.f32 0.5, %v959_v45  ;;  %v1152_v42 = vadd.f32 %v3812_v25, %v540_v40 }
 0x162   : > { %v3881_v37 = vpop.f32.mrb[22].mxu0  ;;  %v2885_v17 = vpop.eup %2884  ;;  %v1788_v19 = vpack.c.bf16 %v3867_v21, %v3844_v50  ;;  %v3898_v41 = vmul.f32 %v1546_v31, %v3784_v57  ;;  %2900 = vtanh.f32 %v3875_v48  ;;  %v1545_v49 = vadd.f32 1.0, %v2883_v12 }
 0x163   : > { %v3890_v23 = vpop.f32.mrb[22].mxu1  ;;  %v3892_v24 = vpop.f32.mrb[23].mxu0  ;;  %2902 = vtanh.f32 %v3877_v6  ;;  %v1787_v34 = vpack.c.bf16 %v3840_v32, %v3827_v29  ;;  %v1547_v36 = vadd.f32 1.0, %v2885_v17  ;;  %v3912_v25 = vmul.f32 0.5, %v1152_v42 }
 0x164   : > { %v3902_v43 = vpop.f32.mrb[23].mxu1  ;;  %v2887_v63 = vpop.eup %2886  ;;  %v1790_v57 = vpack.c.bf16 %v3898_v41, %v3895_v30  ;;  %2904 = vtanh.f32 %v3886_v33  ;;  %v961_v39 = vadd.f32 %v3814_v10, %v545_v38  ;;  %v1154_v29 = vadd.f32 %v3822_v11, %v545_v38 }
 0x165   : > { %v2889_v40 = vpop.eup %2888  ;;  %v1548_v55 = vadd.f32 1.0, %v2887_v63  ;;  %2906 = vtanh.f32 %v3888_v20  ;;  %2015 = vmatprep.subr.bf16.mxu1 %v1787_v34  ;;  %v550_v8 = vpop.permute.xlu0 %549  ;;  %v1541_v32 = vadd.f32 1.0, %v3834_v1  ;;  %v963_v59 = vadd.f32 %v3824_v13, %v545_v38 }
 0x166   : > { %v1550_v56 = vadd.f32 1.0, %v2889_v40  ;;  %2016 = vmatpush1.bf16.msra.mxu1 %v1786_v27  ;;  %v1156_v16 = vadd.f32 %v3832_v28, %v545_v38  ;;  %v2891_v10 = vpop.eup %2890  ;;  %v1543_v11 = vadd.f32 1.0, %v2879_v54  ;;  %v3929_v45 = vmul.f32 %v1545_v49, %v3786_v53 }
 0x167   : > { %v3926_v26 = vpop.f32.mrb[24].mxu0  ;;  %v3931_v1 = vmul.f32 0.5, %v961_v39  ;;  %v3933_v12 = vmul.f32 0.5, %v1154_v29  ;;  %v3940_v4 = vmul.f32 %v1547_v36, %v3792_v22  ;;  %2908 = vtanh.f32 %v3912_v25 }
 0x168   : > { %v3935_v46 = vpop.f32.mrb[24].mxu1  ;;  %v3937_v58 = vpop.f32.mrb[25].mxu0  ;;  %v3943_v14 = vmul.f32 0.5, %v963_v59  ;;  %v3945_v27 = vmul.f32 0.5, %v1156_v16  ;;  %v3952_v54 = vmul.f32 %v1548_v55, %v3808_v0  ;;  %v967_v22 = vadd.f32 %v3864_v9, %v550_v8 }
 0x169   : > { %v2893_v62 = vpop.eup %2892  ;;  %v3947_v53 = vpop.f32.mrb[25].mxu1  ;;  %2910 = vtanh.f32 %v3931_v1  ;;  %v3961_v3 = vmul.f32 %v1550_v56, %v3810_v7  ;;  %v1160_v63 = vadd.f32 %v3870_v60, %v550_v8  ;;  %v969_v60 = vadd.f32 %v3872_v5, %v550_v8 }
 0x16a   : > { %v3949_v13 = vpop.f32.mrb[26].mxu0  ;;  %v2895_v28 = vpop.eup %2894  ;;  %v1552_v31 = vadd.f32 1.0, %v2893_v62  ;;  %2912 = vtanh.f32 %v3933_v12  ;;  %v3971_v40 = vmul.f32 0.5, %v967_v22  ;;  %v1669_v56 = vmul.f32 %v1541_v32, %v3755_v18 }
 0x16b   : > { %v3956_v17 = vpop.f32.mrb[26].mxu1  ;;  %v3958_v42 = vpop.f32.mrb[27].mxu0  ;;  %v1554_v34 = vadd.f32 1.0, %v2895_v28  ;;  %2914 = vtanh.f32 %v3943_v14  ;;  %v3977_v39 = vmul.f32 0.5, %v1160_v63  ;;  %v1162_v18 = vadd.f32 %v3879_v15, %v550_v8 }
 0x16c   : > { %v2897_v49 = vpop.eup %2896  ;;  %v3965_v0 = vpop.f32.mrb[27].mxu1  ;;  %v3968_v36 = vmul.f32 %v1552_v31, %v3846_v51  ;;  %2916 = vtanh.f32 %v3945_v27  ;;  %v1671_v51 = vmul.f32 %v1543_v11, %v3771_v35  ;;  %v1549_v31 = vadd.f32 1.0, %v2891_v10 }
 0x16d   : > { %v2899_v38 = vpop.eup %2898  ;;  %v1553_v9 = vadd.f32 1.0, %v2897_v49  ;;  %v3974_v7 = vmul.f32 %v1554_v34, %v3858_v52  ;;  %v555_v28 = vpop.permute.xlu1 %554  ;;  %v3986_v49 = vmul.f32 0.5, %v969_v60  ;;  %2918 = vtanh.f32 %v3971_v40 }
 0x16e   : > { %v2901_v55 = vpop.eup %2900  ;;  %v1789_v35 = vpack.c.bf16 %v3929_v45, %v1669_v56  ;;  %v1551_v10 = vadd.f32 1.0, %v2899_v38  ;;  %2920 = vtanh.f32 %v3977_v39  ;;  %v1791_v60 = vpack.c.bf16 %v3940_v4, %v1671_v51 }
 0x16f   : > { %v2903_v29 = vpop.eup %2902  ;;  %v1555_v16 = vadd.f32 1.0, %v2901_v55  ;;  %v3988_v34 = vpop.f32.mrb[28].mxu0  ;;  %v3998_v55 = vmul.f32 %v1553_v9, %v3861_v61  ;;  %v4012_v45 = vmul.f32 0.5, %v1162_v18  ;;  %v971_v61 = vadd.f32 %v3881_v37, %v555_v28 }
 0x170   : > { %v2905_v62 = vpop.eup %2904  ;;  %v1556_v22 = vadd.f32 1.0, %v2903_v29  ;;  %v3993_v32 = vpop.f32.mrb[28].mxu1  ;;  %1944 = vmatprep.subr.bf16.mxu0 %v1789_v35  ;;  %2922 = vtanh.f32 %v3986_v49  ;;  %2017 = vmatprep.subr.bf16.mxu1 %v1791_v60  ;;  %v1166_v50 = vadd.f32 %v3902_v43, %v555_v28 }
 0x171   : > { %v2907_v5 = vpop.eup %2906  ;;  %v1558_v63 = vadd.f32 1.0, %v2905_v62  ;;  %v3995_v11 = vpop.f32.mrb[29].mxu0  ;;  %v4007_v15 = vmul.f32 %v1555_v16, %v3875_v48  ;;  %v1164_v48 = vadd.f32 %v3890_v23, %v555_v28  ;;  %1945 = vmatpush1.bf16.msra.mxu0 %v1788_v19  ;;  %2924 = vtanh.f32 %v4012_v45  ;;  %2018 = vmatpush1.bf16.msra.mxu1 %v1790_v57 }
 0x172   : > { %v4002_v29 = vpop.f32.mrb[29].mxu1  ;;  %v4004_v62 = vpop.f32.mrb[30].mxu0  ;;  %v4010_v8 = vmul.f32 %v1556_v22, %v3877_v6  ;;  %v1557_v56 = vadd.f32 1.0, %v2907_v5  ;;  %v973_v6 = vadd.f32 %v3892_v24, %v555_v28  ;;  %v4031_v5 = vmul.f32 0.5, %v971_v61 }
 0x173   : > { %v4015_v38 = vpop.f32.mrb[30].mxu1  ;;  %v4017_v9 = vpop.f32.mrb[31].mxu0  ;;  %v4028_v22 = vmul.f32 %v1558_v63, %v3886_v33  ;;  %v4037_v23 = vmul.f32 0.5, %v1164_v48  ;;  %v4043_v35 = vmul.f32 0.5, %v1166_v50 }
 0x174   : > { %v2909_v4 = vpop.eup %2908  ;;  %v4025_v51 = vpop.f32.mrb[31].mxu1  ;;  %v4039_v24 = vmul.f32 0.5, %v973_v6  ;;  %2926 = vtanh.f32 %v4031_v5  ;;  %v1679_v6 = vmul.f32 %v1551_v10, %v3856_v44 }
 0x175   : > { %v2911_v37 = vpop.eup %2910  ;;  %v560_v16 = vpop.permute.xlu0 %559  ;;  %v1559_v41 = vadd.f32 1.0, %v2909_v4  ;;  %2928 = vtanh.f32 %v4037_v23 }
 0x176   : > { %v2913_v21 = vpop.eup %2912  ;;  %v1560_v19 = vadd.f32 1.0, %v2911_v37  ;;  %v977_v18 = vadd.f32 %v3926_v26, %v560_v16  ;;  %v1170_v60 = vadd.f32 %v3935_v46, %v560_v16  ;;  %2930 = vtanh.f32 %v4039_v24 }
 0x177   : > { %v2915_v33 = vpop.eup %2914  ;;  %v1562_v63 = vadd.f32 1.0, %v2913_v21  ;;  %v4052_v28 = vpop.f32.mrb[32].mxu0  ;;  %2932 = vtanh.f32 %v4043_v35  ;;  %v1795_v37 = vpack.c.bf16 %v4007_v15, %v1679_v6 }
 0x178   : > { %v2917_v30 = vpop.eup %2916  ;;  %v4047_v43 = vmul.f32 %v1560_v19, %v3931_v1  ;;  %v4050_v57 = vmul.f32 0.5, %v977_v18  ;;  %v1561_v61 = vadd.f32 1.0, %v2915_v33  ;;  %v4058_v48 = vmul.f32 0.5, %v1170_v60  ;;  %v4060_v46 = vpop.f32.mrb[32].mxu1 }
 0x179   : > { %v4055_v26 = vmul.f32 %v1562_v63, %v3933_v12  ;;  %v4062_v4 = vpop.f32.mrb[33].mxu0  ;;  %v1677_v1 = vmul.f32 %v1549_v31, %v3830_v47  ;;  %v4069_v12 = vpop.f32.mrb[33].mxu1  ;;  %v4074_v19 = vmul.f32 %v1557_v56, %v3888_v20  ;;  %v1563_v33 = vadd.f32 1.0, %v2917_v30  ;;  %v2827_v31 = vld [vmem:[%s5066_s3 + $0x4] ss:$8 sps:$4 sm:$0xff]   ;;  %2019 = vmatprep.subr.bf16.mxu1 %v1795_v37 }
 0x17a   : > { %v4071_v50 = vpop.f32.mrb[34].mxu0  ;;  %v2919_v21 = vpop.eup %2918  ;;  %2934 = vtanh.f32 %v4050_v57  ;;  %v4087_v63 = vmul.f32 %v1559_v41, %v3912_v25  ;;  %v979_v20 = vadd.f32 %v3937_v58, %v560_v16  ;;  %v1172_v56 = vadd.f32 %v3947_v53, %v560_v16  ;;  %1972 = vmatprep.mubr.bf16.mxu0 %v2827_v31  ;;  %2045 = vmatprep.mubr.bf16.mxu1 %v2827_v31 }
 0x17b   : > { %v4079_v47 = vpop.f32.mrb[34].mxu1  ;;  %v4081_v44 = vpop.f32.mrb[35].mxu0  ;;  %2936 = vtanh.f32 %v4058_v48  ;;  %v4095_v2 = vmul.f32 %v1561_v61, %v3943_v14  ;;  %v1793_v18 = vpack.c.bf16 %v3998_v55, %v1677_v1  ;;  %v4106_v59 = vmul.f32 %v1563_v33, %v3945_v27 }
 0x17c   : > { %v2921_v10 = vpop.eup %2920  ;;  %v4092_v60 = vpop.f32.mrb[35].mxu1  ;;  %v4099_v41 = vmul.f32 0.5, %v979_v20  ;;  %v4101_v52 = vmul.f32 0.5, %v1172_v56  ;;  %v1564_v14 = vadd.f32 1.0, %v2919_v21  ;;  %v5078_v27 = vpack.c.bf16 %v3974_v7, %v3961_v3 }
 0x17d   : > { %v565_v30 = vpop.permute.xlu1 %564  ;;  %v2923_v25 = vpop.eup %2922  ;;  %1946 = vmatprep.subr.bf16.mxu0 %v1793_v18  ;;  %v1566_v1 = vadd.f32 1.0, %v2921_v10 }
 0x17e   : > { %v981_v58 = vadd.f32 %v3949_v13, %v565_v30  ;;  %v1174_v53 = vadd.f32 %v3956_v17, %v565_v30  ;;  %v2925_v16 = vpop.eup %2924  ;;  %v983_v55 = vadd.f32 %v3958_v42, %v565_v30  ;;  %v1176_v15 = vadd.f32 %v3965_v0, %v565_v30  ;;  %v570_v61 = vpop.permute.xlu0 %569  ;;  %2020 = vmatpush1.bf16.msra.mxu1 %v5078_v27 }
 0x17f   : > { %2938 = vtanh.f32 %v4099_v41  ;;  %v5077_v17 = vpack.c.bf16 %v3968_v36, %v3952_v54  ;;  %v4121_v37 = vpop.f32.mrb[36].mxu0  ;;  %v2927_v42 = vpop.eup %2926  ;;  %v987_v18 = vadd.f32 %v3988_v34, %v570_v61  ;;  %v1565_v36 = vadd.f32 1.0, %v2923_v25 }
 0x180   : > { %v4111_v6 = vmul.f32 0.5, %v981_v58  ;;  %v4113_v13 = vmul.f32 0.5, %v1174_v53  ;;  %2940 = vtanh.f32 %v4101_v52  ;;  %v4124_v0 = vmul.f32 0.5, %v983_v55  ;;  %v4129_v33 = vpop.f32.mrb[36].mxu1  ;;  %v4131_v31 = vpop.f32.mrb[37].mxu0 }
 0x181   : > { %1947 = vmatpush1.bf16.msra.mxu0 %v5077_v17  ;;  %v4126_v21 = vmul.f32 0.5, %v1176_v15  ;;  %v2929_v54 = vpop.eup %2928  ;;  %v1568_v10 = vadd.f32 1.0, %v2927_v42  ;;  %v1180_v3 = vadd.f32 %v3993_v32, %v570_v61  ;;  %v4135_v7 = vpop.f32.mrb[37].mxu1  ;;  %v4140_v34 = vmul.f32 0.5, %v987_v18 }
 0x182   : > { %2942 = vtanh.f32 %v4111_v6  ;;  %v4137_v20 = vpop.f32.mrb[38].mxu0  ;;  %v2931_v56 = vpop.eup %2930  ;;  %v1570_v30 = vadd.f32 1.0, %v2929_v54  ;;  %v989_v58 = vadd.f32 %v3995_v11, %v570_v61  ;;  %v4148_v15 = vmul.f32 %v1564_v14, %v3971_v40 }
 0x183   : > { %2944 = vtanh.f32 %v4113_v13  ;;  %v4143_v53 = vpop.f32.mrb[38].mxu1  ;;  %v4145_v25 = vpop.f32.mrb[39].mxu0  ;;  %v4151_v32 = vmul.f32 %v1568_v10, %v4031_v5  ;;  %v4154_v17 = vmul.f32 0.5, %v1180_v3  ;;  %v4159_v11 = vmul.f32 %v1566_v1, %v3977_v39 }
 0x184   : > { %5079 = vst [vmem:[#allocation6_spill] sm:$0xff] %v4143_v53  ;;  %5080 = vst [vmem:[#allocation7_spill] sm:$0xff] %v4145_v25  ;;  %v2933_v55 = vpop.eup %2932  ;;  %2946 = vtanh.f32 %v4124_v0  ;;  %v4156_v27 = vpop.f32.mrb[39].mxu1  ;;  %v4162_v18 = vmul.f32 %v1570_v30, %v4037_v23  ;;  %v4165_v40 = vmul.f32 0.5, %v989_v58  ;;  %v4168_v5 = vmul.f32 %v1565_v36, %v3986_v49 }
 0x185   : > { %5081 = vst [vmem:[#allocation8_spill] sm:$0xff] %v4156_v27  ;;  %v2935_v42 = vpop.eup %2934  ;;  %2948 = vtanh.f32 %v4126_v21  ;;  %v4170_v54 = vadd.f32 1.0, %v2925_v16  ;;  %v580_v39 = vpop.permute.xlu0 %579  ;;  %v1569_v1 = vadd.f32 1.0, %v2931_v56  ;;  %v1571_v3 = vadd.f32 1.0, %v2933_v55 }
 0x186   : > { %v2937_v14 = vpop.eup %2936  ;;  %2950 = vtanh.f32 %v4140_v34  ;;  %v575_v30 = vpop.permute.xlu1 %574  ;;  %v1572_v58 = vadd.f32 1.0, %v2935_v42  ;;  %v1182_v49 = vadd.f32 %v4002_v29, %v570_v61  ;;  %v1797_v16 = vpack.c.bf16 %v4095_v2, %v4074_v19 }
 0x187   : > { %2952 = vtanh.f32 %v4154_v17  ;;  %v4182_v36 = vpop.f32.mrb[40].mxu0  ;;  %v1574_v10 = vadd.f32 1.0, %v2937_v14  ;;  %v1799_v27 = vpack.c.bf16 %v4106_v59, %v4087_v63  ;;  %v991_v56 = vadd.f32 %v4004_v62, %v575_v30 }
 0x188   : > { %2954 = vtanh.f32 %v4165_v40  ;;  %v1184_v55 = vadd.f32 %v4015_v38, %v575_v30  ;;  %v4188_v23 = vpop.f32.mrb[40].mxu1  ;;  %v4190_v42 = vpop.f32.mrb[41].mxu0  ;;  %v4192_v53 = vmul.f32 0.5, %v1182_v49  ;;  %1948 = vmatprep.subr.bf16.mxu0 %v1797_v16  ;;  %v993_v2 = vadd.f32 %v4017_v9, %v575_v30 }
 0x189   : > { %v2939_v25 = vpop.eup %2938  ;;  %v1186_v29 = vadd.f32 %v4025_v51, %v575_v30  ;;  %v997_v19 = vadd.f32 %v4052_v28, %v580_v39  ;;  %v4197_v61 = vpop.f32.mrb[41].mxu1  ;;  %v4202_v38 = vmul.f32 %v1569_v1, %v4039_v24  ;;  %2021 = vmatprep.subr.bf16.mxu1 %v1799_v27  ;;  %v4204_v63 = vmul.f32 0.5, %v991_v56 }
 0x18a   : > { %v4199_v59 = vpop.f32.mrb[42].mxu0  ;;  %v2941_v62 = vpop.eup %2940  ;;  %v4206_v14 = vmul.f32 0.5, %v1184_v55  ;;  %v5082_v9 = vpack.c.bf16 %v4047_v43, %v4010_v8  ;;  %v1190_v51 = vadd.f32 %v4060_v46, %v580_v39  ;;  %v1699_v16 = vmul.f32 %v1571_v3, %v4043_v35 }
 0x18b   : > { %v4212_v28 = vpop.f32.mrb[42].mxu1  ;;  %v4214_v30 = vpop.f32.mrb[43].mxu0  ;;  %2956 = vtanh.f32 %v4192_v53  ;;  %v5083_v24 = vpack.c.bf16 %v4055_v26, %v4028_v22  ;;  %v4221_v27 = vmul.f32 0.5, %v993_v2  ;;  %v4223_v1 = vmul.f32 0.5, %v1186_v29 }
 0x18c   : > { %1949 = vmatpush1.bf16.msra.mxu0 %v5082_v9  ;;  %v2943_v49 = vpop.eup %2942  ;;  %v4225_v8 = vpop.f32.mrb[43].mxu1  ;;  %v4228_v46 = vmul.f32 %v1572_v58, %v4050_v57  ;;  %v4231_v56 = vmul.f32 %v1574_v10, %v4058_v48  ;;  %2958 = vtanh.f32 %v4204_v63  ;;  %v4235_v22 = vmul.f32 0.5, %v997_v19 }
 0x18d   : > { %2022 = vmatpush1.bf16.msra.mxu1 %v5083_v24  ;;  %v2945_v43 = vpop.eup %2944  ;;  %v1576_v35 = vadd.f32 1.0, %v2943_v49  ;;  %2960 = vtanh.f32 %v4206_v14  ;;  %v4237_v26 = vmul.f32 0.5, %v1190_v51  ;;  %v999_v48 = vadd.f32 %v4062_v4, %v580_v39  ;;  %v585_v58 = vpop.permute.xlu1 %584 }
 0x18e   : > { %v2947_v3 = vpop.eup %2946  ;;  %v1578_v55 = vadd.f32 1.0, %v2945_v43  ;;  %2962 = vtanh.f32 %v4221_v27  ;;  %v1192_v19 = vadd.f32 %v4069_v12, %v580_v39  ;;  %v4253_v43 = vadd.f32 1.0, %v2939_v25 }
 0x18f   : > { %v2949_v2 = vpop.eup %2948  ;;  %v4240_v29 = vmul.f32 %v1576_v35, %v4111_v6  ;;  %v1577_v57 = vadd.f32 1.0, %v2947_v3  ;;  %2964 = vtanh.f32 %v4223_v1  ;;  %v4249_v51 = vpop.f32.mrb[44].mxu0  ;;  %v1695_v6 = vmul.f32 %v4170_v54, %v4012_v45 }
 0x190   : > { %v2951_v10 = vpop.eup %2950  ;;  %v4245_v9 = vmul.f32 %v1578_v55, %v4113_v13  ;;  %v1579_v49 = vadd.f32 1.0, %v2949_v2  ;;  %v4257_v3 = vpop.f32.mrb[44].mxu1  ;;  %v4261_v2 = vadd.f32 1.0, %v2941_v62  ;;  %2966 = vtanh.f32 %v4235_v22 }
 0x191   : > { %v2953_v24 = vpop.eup %2952  ;;  %v1580_v35 = vadd.f32 1.0, %v2951_v10  ;;  %v4259_v13 = vpop.f32.mrb[45].mxu0  ;;  %v4266_v39 = vmul.f32 %v1577_v57, %v4124_v0  ;;  %v4276_v4 = vmul.f32 0.5, %v999_v48  ;;  %v4278_v62 = vmul.f32 0.5, %v1192_v19 }
 0x192   : > { %5084 = vst [vmem:[#allocation9_spill] sm:$0xff] %v4259_v13  ;;  %v2955_v55 = vpop.eup %2954  ;;  %v4269_v45 = vpop.f32.mrb[45].mxu1  ;;  %v4274_v54 = vmul.f32 %v1579_v49, %v4126_v21  ;;  %v1582_v10 = vadd.f32 1.0, %v2953_v24  ;;  %2968 = vtanh.f32 %v4237_v26  ;;  %v1801_v0 = vpack.c.bf16 %v4202_v38, %v4168_v5 }
 0x193   : > { %5085 = vst [vmem:[#allocation10_spill] sm:$0xff] %v4269_v45  ;;  %v4271_v25 = vpop.f32.mrb[46].mxu0  ;;  %v4280_v13 = vpop.f32.mrb[46].mxu1  ;;  %v1803_v57 = vpack.c.bf16 %v1699_v16, %v1695_v6  ;;  %v4291_v48 = vmul.f32 %v1580_v35, %v4140_v34  ;;  %v1581_v49 = vadd.f32 1.0, %v2955_v55  ;;  %v1194_v19 = vadd.f32 %v4079_v47, %v585_v58 }
 0x194   : > { %5086 = vst [vmem:[#allocation11_spill] sm:$0xff] %v4271_v25  ;;  %v4282_v12 = vpop.f32.mrb[47].mxu0  ;;  %v1001_v25 = vadd.f32 %v4071_v50, %v585_v58  ;;  %v4288_v45 = vpop.f32.mrb[47].mxu1  ;;  %v1003_v24 = vadd.f32 %v4081_v44, %v585_v58  ;;  %2970 = vtanh.f32 %v4276_v4  ;;  %1950 = vmatprep.subr.bf16.mxu0 %v1801_v0  ;;  %v1196_v50 = vadd.f32 %v4092_v60, %v585_v58 }
 0x195   : > { %5087 = vst [vmem:[#allocation12_spill] sm:$0xff] %v4282_v12  ;;  %v590_v21 = vpop.permute.xlu0 %589  ;;  %v2957_v12 = vpop.eup %2956  ;;  %2023 = vmatprep.subr.bf16.mxu1 %v1803_v57  ;;  %2972 = vtanh.f32 %v4278_v62  ;;  %v4301_v34 = vmul.f32 0.5, %v1194_v19  ;;  %v5088_v47 = vpack.c.bf16 %v4151_v32, %v4148_v15  ;;  %v5089_v44 = vpack.c.bf16 %v4162_v18, %v4159_v11 }
 0x196   : > { %v4296_v5 = vmul.f32 0.5, %v1001_v25  ;;  %v1007_v38 = vadd.f32 %v4121_v37, %v590_v21  ;;  %v2959_v16 = vpop.eup %2958  ;;  %v4309_v6 = vmul.f32 0.5, %v1003_v24  ;;  %v1200_v35 = vadd.f32 %v4129_v33, %v590_v21 }
 0x197   : > { %1951 = vmatpush1.bf16.msra.mxu0 %v5088_v47  ;;  %2024 = vmatpush1.bf16.msra.mxu1 %v5089_v44  ;;  %v2961_v60 = vpop.eup %2960  ;;  %v1584_v58 = vadd.f32 1.0, %v2959_v16  ;;  %v4313_v37 = vmul.f32 0.5, %v1196_v50  ;;  %v4317_v25 = vpop.f32.mrb[48].mxu0  ;;  %v4320_v32 = vmul.f32 %v1582_v10, %v4154_v17  ;;  %v1583_v19 = vadd.f32 1.0, %v2957_v12 }
 0x198   : > { %2974 = vtanh.f32 %v4296_v5  ;;  %v4315_v55 = vmul.f32 0.5, %v1007_v38  ;;  %v2963_v15 = vpop.eup %2962  ;;  %v1586_v11 = vadd.f32 1.0, %v2961_v60  ;;  %v4323_v18 = vmul.f32 0.5, %v1200_v35  ;;  %v4325_v33 = vpop.f32.mrb[48].mxu1 }
 0x199   : > { %2976 = vtanh.f32 %v4301_v34  ;;  %v4327_v0 = vpop.f32.mrb[49].mxu0  ;;  %v2965_v57 = vpop.eup %2964  ;;  %v4330_v24 = vmul.f32 %v1584_v58, %v4204_v63  ;;  %v1009_v50 = vadd.f32 %v4131_v31, %v590_v21  ;;  %v1585_v16 = vadd.f32 1.0, %v2963_v15 }
 0x19a   : > { %2978 = vtanh.f32 %v4309_v6  ;;  %v4334_v17 = vpop.f32.mrb[49].mxu1  ;;  %v4336_v10 = vpop.f32.mrb[50].mxu0  ;;  %v4339_v38 = vmul.f32 %v1586_v11, %v4206_v14  ;;  %v1202_v47 = vadd.f32 %v4135_v7, %v590_v21  ;;  %v1701_v31 = vmul.f32 %v4253_v43, %v4099_v41 }
 0x19b   : > { %2980 = vtanh.f32 %v4313_v37  ;;  %v4343_v12 = vpop.f32.mrb[50].mxu1  ;;  %v4345_v63 = vpop.f32.mrb[51].mxu0  ;;  %v1587_v60 = vadd.f32 1.0, %v2965_v57  ;;  %v1703_v58 = vmul.f32 %v4261_v2, %v4101_v52  ;;  %v4357_v7 = vmul.f32 %v1581_v49, %v4165_v40  ;;  %v5093_v49 = vld [vmem:[#allocation6_spill] sm:$0xff] }
 0x19c   : > { %5090 = vst [vmem:[#allocation13_spill] sm:$0xff] %v4343_v12  ;;  %5091 = vst [vmem:[#allocation14_spill] sm:$0xff] %v4345_v63  ;;  %v2967_v44 = vpop.eup %2966  ;;  %2982 = vtanh.f32 %v4315_v55  ;;  %v4352_v14 = vpop.f32.mrb[51].mxu1  ;;  %v4363_v15 = vmul.f32 %v1583_v19, %v4192_v53  ;;  %v4365_v11 = vmul.f32 0.5, %v1009_v50  ;;  %v4367_v57 = vmul.f32 0.5, %v1202_v47  ;;  %v5094_v50 = vld [vmem:[#allocation7_spill] sm:$0xff] }
 0x19d   : > { %5092 = vst [vmem:[#allocation15_spill] sm:$0xff] %v4352_v14  ;;  %2984 = vtanh.f32 %v4323_v18  ;;  %v2969_v41 = vpop.eup %2968  ;;  %v595_v43 = vpop.permute.xlu1 %594  ;;  %v1805_v35 = vpack.c.bf16 %v4266_v39, %v1701_v31  ;;  %v4371_v52 = vmul.f32 %v1585_v16, %v4221_v27  ;;  %v1807_v40 = vpack.c.bf16 %v4274_v54, %v1703_v58  ;;  %v5095_v12 = vld [vmem:[#allocation8_spill] sm:$0xff] }
 0x19e   : > { %v1011_v2 = vadd.f32 %v4137_v20, %v595_v43  ;;  %v1204_v21 = vadd.f32 %v5093_v49, %v595_v43  ;;  %v2971_v14 = vpop.eup %2970  ;;  %v600_v63 = vpop.permute.xlu0 %599  ;;  %v4377_v53 = vmul.f32 %v1587_v60, %v4223_v1  ;;  %v1588_v19 = vadd.f32 1.0, %v2967_v44 }
 0x19f   : > { %1952 = vmatprep.subr.bf16.mxu0 %v1805_v35  ;;  %v1013_v47 = vadd.f32 %v5094_v50, %v595_v43  ;;  %v1206_v39 = vadd.f32 %v5095_v12, %v595_v43  ;;  %v4381_v31 = vpop.f32.mrb[52].mxu0  ;;  %v2973_v27 = vpop.eup %2972  ;;  %v1590_v16 = vadd.f32 1.0, %v2969_v41  ;;  %2986 = vtanh.f32 %v4365_v11  ;;  %2025 = vmatprep.subr.bf16.mxu1 %v1807_v40 }
 0x1a0   : > { %v4384_v20 = vmul.f32 0.5, %v1011_v2  ;;  %v4386_v54 = vmul.f32 0.5, %v1204_v21  ;;  %v5096_v1 = vpack.c.bf16 %v4240_v29, %v4228_v46  ;;  %v4391_v44 = vpop.f32.mrb[52].mxu1  ;;  %v4393_v35 = vpop.f32.mrb[53].mxu0  ;;  %2988 = vtanh.f32 %v4367_v57 }
 0x1a1   : > { %v5097_v60 = vpack.c.bf16 %v4245_v9, %v4231_v56  ;;  %v4399_v58 = vmul.f32 0.5, %v1013_v47  ;;  %v4401_v41 = vmul.f32 0.5, %v1206_v39  ;;  %v1017_v21 = vadd.f32 %v4182_v36, %v600_v63  ;;  %v4404_v43 = vpop.f32.mrb[53].mxu1  ;;  %v4406_v46 = vpop.f32.mrb[54].mxu0 }
 0x1a2   : > { %1953 = vmatpush1.bf16.msra.mxu0 %v5096_v1  ;;  %v2975_v12 = vpop.eup %2974  ;;  %v1589_v40 = vadd.f32 1.0, %v2971_v14  ;;  %2990 = vtanh.f32 %v4384_v20  ;;  %v1210_v49 = vadd.f32 %v4188_v23, %v600_v63  ;;  %v4410_v50 = vpop.f32.mrb[54].mxu1  ;;  %v1019_v39 = vadd.f32 %v4190_v42, %v600_v63 }
 0x1a3   : > { %2026 = vmatpush1.bf16.msra.mxu1 %v5097_v60  ;;  %v2977_v29 = vpop.eup %2976  ;;  %v1592_v2 = vadd.f32 1.0, %v2975_v12  ;;  %5098 = vst [vmem:[#allocation6_spill] sm:$0xff] %v4410_v50  ;;  %v4412_v56 = vpop.f32.mrb[55].mxu0  ;;  %2992 = vtanh.f32 %v4386_v54  ;;  %v4415_v36 = vmul.f32 0.5, %v1017_v21  ;;  %v4421_v12 = vmul.f32 %v1588_v19, %v4235_v22 }
 0x1a4   : > { %5099 = vst [vmem:[#allocation7_spill] sm:$0xff] %v4412_v56  ;;  %v2979_v9 = vpop.eup %2978  ;;  %v1594_v47 = vadd.f32 1.0, %v2977_v29  ;;  %v4418_v1 = vpop.f32.mrb[55].mxu1  ;;  %2994 = vtanh.f32 %v4399_v58  ;;  %v4427_v60 = vmul.f32 0.5, %v1210_v49  ;;  %v4430_v56 = vmul.f32 %v1590_v16, %v4237_v26 }
 0x1a5   : > { %5100 = vst [vmem:[#allocation8_spill] sm:$0xff] %v4418_v1  ;;  %v2981_v14 = vpop.eup %2980  ;;  %v4424_v23 = vmul.f32 %v1592_v2, %v4296_v5  ;;  %2996 = vtanh.f32 %v4401_v41  ;;  %v4436_v42 = vmul.f32 0.5, %v1019_v39  ;;  %v610_v19 = vpop.permute.xlu0 %609  ;;  %v4438_v1 = vadd.f32 1.0, %v2973_v27 }
 0x1a6   : > { %v2983_v29 = vpop.eup %2982  ;;  %v4433_v21 = vmul.f32 %v1594_v47, %v4301_v34  ;;  %v1593_v2 = vadd.f32 1.0, %v2979_v9  ;;  %2998 = vtanh.f32 %v4415_v36  ;;  %v605_v49 = vpop.permute.xlu1 %604  ;;  %v4444_v26 = vmul.f32 %v1589_v40, %v4276_v4 }
 0x1a7   : > { %v2985_v22 = vpop.eup %2984  ;;  %v1595_v16 = vadd.f32 1.0, %v2981_v14  ;;  %3000 = vtanh.f32 %v4427_v60  ;;  %v4449_v47 = vpop.f32.mrb[56].mxu0  ;;  %v1596_v27 = vadd.f32 1.0, %v2983_v29  ;;  %v1212_v39 = vadd.f32 %v4197_v61, %v600_v63 }
 0x1a8   : > { %5101 = vst [vmem:[#allocation16_spill] sm:$0xff] %v4449_v47  ;;  %3002 = vtanh.f32 %v4436_v42  ;;  %v1809_v9 = vpack.c.bf16 %v4371_v52, %v4357_v7  ;;  %v4455_v5 = vpop.f32.mrb[56].mxu1  ;;  %v4457_v4 = vpop.f32.mrb[57].mxu0  ;;  %v1598_v40 = vadd.f32 1.0, %v2985_v22  ;;  %v1811_v14 = vpack.c.bf16 %v4377_v53, %v4363_v15 }
 0x1a9   : > { %v1021_v34 = vadd.f32 %v4199_v59, %v605_v49  ;;  %v1214_v47 = vadd.f32 %v4212_v28, %v605_v49  ;;  %v4463_v29 = vpop.f32.mrb[57].mxu1  ;;  %v4465_v50 = vpop.f32.mrb[58].mxu0  ;;  %v4468_v63 = vmul.f32 %v1593_v2, %v4309_v6  ;;  %v4470_v7 = vmul.f32 0.5, %v1212_v39 }
 0x1aa   : > { %5102 = vst [vmem:[#allocation17_spill] sm:$0xff] %v4465_v50  ;;  %v2987_v61 = vpop.eup %2986  ;;  %1954 = vmatprep.subr.bf16.mxu0 %v1809_v9  ;;  %v1023_v52 = vadd.f32 %v4214_v30, %v605_v49  ;;  %v1216_v22 = vadd.f32 %v4225_v8, %v605_v49  ;;  %v4474_v15 = vpop.f32.mrb[58].mxu1  ;;  %v4479_v53 = vmul.f32 %v1595_v16, %v4313_v37 }
 0x1ab   : > { %v4476_v59 = vpop.f32.mrb[59].mxu0  ;;  %v2989_v28 = vpop.eup %2988  ;;  %2027 = vmatprep.subr.bf16.mxu1 %v1811_v14  ;;  %v4481_v50 = vmul.f32 0.5, %v1021_v34  ;;  %v4483_v6 = vmul.f32 0.5, %v1214_v47  ;;  %v5103_v2 = vpack.c.bf16 %v4330_v24, %v4291_v48  ;;  %v1027_v30 = vadd.f32 %v4249_v51, %v610_v19 }
 0x1ac   : > { %v4489_v8 = vpop.f32.mrb[59].mxu1  ;;  %v2991_v49 = vpop.eup %2990  ;;  %v4492_v39 = vmul.f32 %v1596_v27, %v4315_v55  ;;  %3004 = vtanh.f32 %v4470_v7  ;;  %v5104_v37 = vpack.c.bf16 %v4339_v38, %v4320_v32  ;;  %v4498_v34 = vmul.f32 0.5, %v1023_v52  ;;  %v5105_v38 = vld [vmem:[#allocation9_spill] sm:$0xff] }
 0x1ad   : > { %1955 = vmatpush1.bf16.msra.mxu0 %v5103_v2  ;;  %v4500_v16 = vmul.f32 0.5, %v1216_v22  ;;  %v2993_v48 = vpop.eup %2992  ;;  %v4503_v24 = vmul.f32 %v1598_v40, %v4323_v18  ;;  %v1600_v51 = vadd.f32 1.0, %v2991_v49  ;;  %3006 = vtanh.f32 %v4481_v50  ;;  %v5106_v18 = vld [vmem:[#allocation10_spill] sm:$0xff] }
 0x1ae   : > { %2028 = vmatpush1.bf16.msra.mxu1 %v5104_v37  ;;  %v4506_v47 = vmul.f32 0.5, %v1027_v30  ;;  %v2995_v55 = vpop.eup %2994  ;;  %v1602_v27 = vadd.f32 1.0, %v2993_v48  ;;  %3008 = vtanh.f32 %v4483_v6  ;;  %v1220_v32 = vadd.f32 %v4257_v3, %v610_v19 }
 0x1af   : > { %v1029_v9 = vadd.f32 %v5105_v38, %v610_v19  ;;  %v2997_v14 = vpop.eup %2996  ;;  %v4512_v52 = vmul.f32 %v1600_v51, %v4384_v20  ;;  %v1601_v22 = vadd.f32 1.0, %v2995_v55  ;;  %3010 = vtanh.f32 %v4498_v34  ;;  %v4516_v2 = vpop.f32.mrb[60].mxu0 }
 0x1b0   : > { %v1222_v40 = vadd.f32 %v5106_v18, %v610_v19  ;;  %5107 = vst [vmem:[#allocation9_spill] sm:$0xff] %v4516_v2  ;;  %v2999_v30 = vpop.eup %2998  ;;  %v4519_v49 = vmul.f32 %v1602_v27, %v4386_v54  ;;  %v1603_v37 = vadd.f32 1.0, %v2997_v14  ;;  %3012 = vtanh.f32 %v4500_v16  ;;  %v4524_v48 = vpop.f32.mrb[60].mxu1 }
 0x1b1   : > { %v4522_v3 = vmul.f32 0.5, %v1220_v32  ;;  %5108 = vst [vmem:[#allocation10_spill] sm:$0xff] %v4524_v48  ;;  %v4526_v20 = vpop.f32.mrb[61].mxu0  ;;  %v3001_v51 = vpop.eup %3000  ;;  %v1719_v55 = vmul.f32 %v4438_v1, %v4278_v62  ;;  %v1597_v19 = vadd.f32 1.0, %v2987_v61  ;;  %v1604_v18 = vadd.f32 1.0, %v2999_v30  ;;  %v5115_v48 = vld [vmem:[#allocation11_spill] sm:$0xff] }
 0x1b2   : > { %5109 = vst [vmem:[#allocation18_spill] sm:$0xff] %v4526_v20  ;;  %v4532_v54 = vpop.f32.mrb[61].mxu1  ;;  %v4534_v27 = vpop.f32.mrb[62].mxu0  ;;  %v1599_v32 = vadd.f32 1.0, %v2989_v28  ;;  %v4539_v20 = vmul.f32 %v1601_v22, %v4399_v58  ;;  %3014 = vtanh.f32 %v4506_v47  ;;  %v4547_v30 = vmul.f32 %v1603_v37, %v4401_v41 }
 0x1b3   : > { %5110 = vst [vmem:[#allocation19_spill] sm:$0xff] %v4532_v54  ;;  %5111 = vst [vmem:[#allocation20_spill] sm:$0xff] %v4534_v27  ;;  %v3003_v14 = vpop.eup %3002  ;;  %v4542_v62 = vpop.f32.mrb[62].mxu1  ;;  %v1606_v38 = vadd.f32 1.0, %v3001_v51  ;;  %v4549_v27 = vmul.f32 0.5, %v1029_v9  ;;  %v4551_v28 = vmul.f32 0.5, %v1222_v40  ;;  %3016 = vtanh.f32 %v4522_v3 }
 0x1b4   : > { %5112 = vst [vmem:[#allocation21_spill] sm:$0xff] %v4542_v62  ;;  %v4544_v1 = vpop.f32.mrb[63].mxu0  ;;  %v615_v61 = vpop.permute.xlu1 %614  ;;  %v1813_v58 = vpack.c.bf16 %v4468_v63, %v4444_v26  ;;  %v1815_v22 = vpack.c.bf16 %v4479_v53, %v1719_v55  ;;  %v4561_v41 = vmul.f32 %v1604_v18, %v4415_v36  ;;  %v1605_v37 = vadd.f32 1.0, %v3003_v14  ;;  %v5116_v40 = vld [vmem:[#allocation12_spill] sm:$0xff] }
 0x1b5   : > { %5113 = vst [vmem:[#allocation22_spill] sm:$0xff] %v4544_v1  ;;  %v4553_v54 = vpop.f32.mrb[63].mxu1  ;;  %v1031_v1 = vadd.f32 %v5115_v48, %v615_v61  ;;  %v620_v62 = vpop.permute.xlu0 %619  ;;  %v1224_v9 = vadd.f32 %v4280_v13, %v615_v61  ;;  %v1033_v51 = vadd.f32 %v5116_v40, %v615_v61  ;;  %3018 = vtanh.f32 %v4549_v27 }
 0x1b6   : > { %5114 = vst [vmem:[#allocation23_spill] sm:$0xff] %v4553_v54  ;;  %v3005_v2 = vpop.eup %3004  ;;  %1956 = vmatprep.subr.bf16.mxu0 %v1813_v58  ;;  %2029 = vmatprep.subr.bf16.mxu1 %v1815_v22  ;;  %v1226_v26 = vadd.f32 %v4288_v45, %v615_v61  ;;  %v1037_v63 = vadd.f32 %v4317_v25, %v620_v62  ;;  %3020 = vtanh.f32 %v4551_v28 }
 0x1b7   : > { %v4566_v54 = vmul.f32 0.5, %v1031_v1  ;;  %v3007_v53 = vpop.eup %3006  ;;  %v4571_v36 = vmul.f32 0.5, %v1224_v9  ;;  %v5117_v13 = vpack.c.bf16 %v4424_v23, %v4421_v12  ;;  %v5118_v48 = vpack.c.bf16 %v4433_v21, %v4430_v56 }
 0x1b8   : > { %v4579_v55 = vmul.f32 0.5, %v1033_v51  ;;  %v1230_v18 = vadd.f32 %v4325_v33, %v620_v62  ;;  %v3009_v45 = vpop.eup %3008  ;;  %v1608_v14 = vadd.f32 1.0, %v3007_v53  ;;  %v4583_v25 = vmul.f32 0.5, %v1226_v26 }
 0x1b9   : > { %1957 = vmatpush1.bf16.msra.mxu0 %v5117_v13  ;;  %2030 = vmatpush1.bf16.msra.mxu1 %v5118_v48  ;;  %3022 = vtanh.f32 %v4566_v54  ;;  %v4585_v1 = vmul.f32 0.5, %v1037_v63  ;;  %v3011_v61 = vpop.eup %3010  ;;  %v4588_v12 = vmul.f32 %v1606_v38, %v4427_v60  ;;  %v1610_v23 = vadd.f32 1.0, %v3009_v45  ;;  %v5120_v45 = vld [vmem:[#allocation14_spill] sm:$0xff] }
 0x1ba   : > { %3024 = vtanh.f32 %v4571_v36  ;;  %v4591_v56 = vmul.f32 0.5, %v1230_v18  ;;  %v3013_v21 = vpop.eup %3012  ;;  %v1607_v58 = vadd.f32 1.0, %v3005_v2  ;;  %v4594_v33 = vmul.f32 %v1608_v14, %v4481_v50 }
 0x1bb   : > { %3026 = vtanh.f32 %v4579_v55  ;;  %v1039_v22 = vadd.f32 %v4327_v0, %v620_v62  ;;  %v4599_v9 = vmul.f32 %v1610_v23, %v4483_v6  ;;  %v1609_v40 = vadd.f32 1.0, %v3011_v61  ;;  %v5121_v61 = vld [vmem:[#allocation15_spill] sm:$0xff] }
 0x1bc   : > { %3028 = vtanh.f32 %v4583_v25  ;;  %v1232_v60 = vadd.f32 %v4334_v17, %v620_v62  ;;  %v3015_v38 = vpop.eup %3014  ;;  %v1725_v51 = vmul.f32 %v1597_v19, %v4365_v11  ;;  %v1820_v2 = vpack.c.bf16 %v4594_v33, %v4561_v41  ;;  %v625_v62 = vpop.permute.xlu1 %624 }
 0x1bd   : > { %v1611_v50 = vadd.f32 1.0, %v3013_v21  ;;  %3030 = vtanh.f32 %v4585_v1  ;;  %v1727_v26 = vmul.f32 %v1599_v32, %v4367_v57  ;;  %v4609_v0 = vmul.f32 %v1605_v37, %v4436_v42  ;;  %v3017_v17 = vpop.eup %3016  ;;  %v5119_v37 = vld [vmem:[#allocation13_spill] sm:$0xff]  ;;  %v630_v21 = vpop.permute.xlu0 %629 }
 0x1be   : > { %v1822_v6 = vpack.c.bf16 %v4599_v9, %v4588_v12  ;;  %3032 = vtanh.f32 %v4591_v56  ;;  %v4615_v11 = vmul.f32 %v1607_v58, %v4470_v7  ;;  %v4617_v19 = vmul.f32 0.5, %v1039_v22 }
 0x1bf   : > { %v4619_v63 = vmul.f32 0.5, %v1232_v60  ;;  %v1817_v53 = vpack.c.bf16 %v4539_v20, %v1725_v51  ;;  %v4623_v57 = vmul.f32 %v1609_v40, %v4498_v34  ;;  %v1819_v42 = vpack.c.bf16 %v4547_v30, %v1727_v26  ;;  %v3019_v48 = vpop.eup %3018 }
 0x1c0   : > { %v1041_v32 = vadd.f32 %v4336_v10, %v625_v62  ;;  %v1234_v13 = vadd.f32 %v5119_v37, %v625_v62  ;;  %v4629_v18 = vmul.f32 %v1611_v50, %v4500_v16  ;;  %v1612_v7 = vadd.f32 1.0, %v3015_v38  ;;  %v3021_v20 = vpop.eup %3020 }
 0x1c1   : > { %1958 = vmatprep.subr.bf16.mxu0 %v1817_v53  ;;  %v1043_v14 = vadd.f32 %v5120_v45, %v625_v62  ;;  %v1236_v23 = vadd.f32 %v5121_v61, %v625_v62  ;;  %v1614_v34 = vadd.f32 1.0, %v3017_v17  ;;  %3034 = vtanh.f32 %v4617_v19  ;;  %2031 = vmatprep.subr.bf16.mxu1 %v1819_v42  ;;  %v635_v45 = vpop.permute.xlu1 %634 }
 0x1c2   : > { %v4634_v30 = vmul.f32 0.5, %v1041_v32  ;;  %v4636_v10 = vmul.f32 0.5, %v1234_v13  ;;  %v5122_v16 = vpack.c.bf16 %v4512_v52, %v4492_v39  ;;  %3036 = vtanh.f32 %v4619_v63 }
 0x1c3   : > { %v3023_v58 = vpop.eup %3022  ;;  %v5123_v22 = vpack.c.bf16 %v4519_v49, %v4503_v24  ;;  %v4645_v40 = vmul.f32 0.5, %v1043_v14  ;;  %v4647_v60 = vmul.f32 0.5, %v1236_v23  ;;  %v1047_v38 = vadd.f32 %v4381_v31, %v630_v21 }
 0x1c4   : > { %1959 = vmatpush1.bf16.msra.mxu0 %v5122_v16  ;;  %v3025_v51 = vpop.eup %3024  ;;  %v1613_v50 = vadd.f32 1.0, %v3019_v48  ;;  %v1616_v26 = vadd.f32 1.0, %v3023_v58  ;;  %3038 = vtanh.f32 %v4634_v30  ;;  %v1240_v39 = vadd.f32 %v4391_v44, %v630_v21  ;;  %v5124_v16 = vld [vmem:[#allocation6_spill] sm:$0xff] }
 0x1c5   : > { %2032 = vmatpush1.bf16.msra.mxu1 %v5123_v22  ;;  %v3027_v52 = vpop.eup %3026  ;;  %v1618_v17 = vadd.f32 1.0, %v3025_v51  ;;  %3040 = vtanh.f32 %v4636_v10  ;;  %v4653_v62 = vmul.f32 0.5, %v1047_v38  ;;  %v1049_v24 = vadd.f32 %v4393_v35, %v630_v21  ;;  %v640_v38 = vpop.permute.xlu0 %639 }
 0x1c6   : > { %v3029_v49 = vpop.eup %3028  ;;  %v4657_v53 = vmul.f32 %v1612_v7, %v4506_v47  ;;  %v4660_v31 = vmul.f32 %v1616_v26, %v4566_v54  ;;  %3042 = vtanh.f32 %v4645_v40  ;;  %v4663_v42 = vmul.f32 0.5, %v1240_v39  ;;  %v5126_v26 = vld [vmem:[#allocation8_spill] sm:$0xff] }
 0x1c7   : > { %v3031_v44 = vpop.eup %3030  ;;  %v4666_v32 = vmul.f32 %v1614_v34, %v4522_v3  ;;  %v4669_v37 = vmul.f32 %v1618_v17, %v4571_v36  ;;  %3044 = vtanh.f32 %v4647_v60  ;;  %v4672_v35 = vmul.f32 0.5, %v1049_v24 }
 0x1c8   : > { %v3033_v47 = vpop.eup %3032  ;;  %v1615_v13 = vadd.f32 1.0, %v3021_v20  ;;  %v1824_v54 = vpack.c.bf16 %v4660_v31, %v4657_v53  ;;  %v1617_v48 = vadd.f32 1.0, %v3027_v52  ;;  %3046 = vtanh.f32 %v4653_v62 }
 0x1c9   : > { %v4678_v7 = vmul.f32 %v1613_v50, %v4549_v27  ;;  %v1826_v3 = vpack.c.bf16 %v4669_v37, %v4666_v32  ;;  %v1619_v36 = vadd.f32 1.0, %v3029_v49  ;;  %3048 = vtanh.f32 %v4663_v42 }
 0x1ca   : > { %v1620_v14 = vadd.f32 1.0, %v3031_v44  ;;  %3050 = vtanh.f32 %v4672_v35  ;;  %v1242_v61 = vadd.f32 %v4404_v43, %v630_v21  ;;  %v1821_v23 = vpack.c.bf16 %v4623_v57, %v4609_v0  ;;  %v5125_v43 = vld [vmem:[#allocation7_spill] sm:$0xff] }
 0x1cb   : > { %v1622_v20 = vadd.f32 1.0, %v3033_v47  ;;  %v1823_v27 = vpack.c.bf16 %v4629_v18, %v4615_v11  ;;  %v1051_v34 = vadd.f32 %v4406_v46, %v635_v45  ;;  %v1244_v58 = vadd.f32 %v5124_v16, %v635_v45  ;;  %v3035_v22 = vpop.eup %3034  ;;  %v645_v16 = vpop.permute.xlu1 %644 }
 0x1cc   : > { %v4692_v51 = vmul.f32 %v1617_v48, %v4579_v55  ;;  %v4694_v50 = vmul.f32 0.5, %v1242_v61  ;;  %1960 = vmatprep.subr.bf16.mxu0 %v1821_v23  ;;  %v1053_v21 = vadd.f32 %v5125_v43, %v635_v45  ;;  %v1246_v0 = vadd.f32 %v5126_v26, %v635_v45  ;;  %v3037_v57 = vpop.eup %3036  ;;  %v5127_v55 = vld [vmem:[#allocation16_spill] sm:$0xff]  ;;  %v650_v26 = vpop.permute.xlu0 %649 }
 0x1cd   : > { %v1747_v39 = vmul.f32 %v1619_v36, %v4583_v25  ;;  %2033 = vmatprep.subr.bf16.mxu1 %v1823_v27  ;;  %v4699_v11 = vmul.f32 0.5, %v1051_v34  ;;  %v4701_v46 = vmul.f32 0.5, %v1244_v58  ;;  %1961 = vmatpush1.bf16.msra.mxu0 %v1820_v2  ;;  %v1057_v18 = vadd.f32 %v5127_v55, %v640_v38 }
 0x1ce   : > { %v3039_v52 = vpop.eup %3038  ;;  %v4708_v17 = vmul.f32 %v1620_v14, %v4585_v1  ;;  %3052 = vtanh.f32 %v4694_v50  ;;  %2034 = vmatpush1.bf16.msra.mxu1 %v1822_v6  ;;  %v4714_v25 = vmul.f32 0.5, %v1053_v21  ;;  %v4716_v24 = vmul.f32 0.5, %v1246_v0  ;;  %v5128_v21 = vld [vmem:[#allocation17_spill] sm:$0xff] }
 0x1cf   : > { %v3041_v49 = vpop.eup %3040  ;;  %v4719_v41 = vmul.f32 %v1622_v20, %v4591_v56  ;;  %v1624_v33 = vadd.f32 1.0, %v3039_v52  ;;  %3054 = vtanh.f32 %v4699_v11  ;;  %v4722_v2 = vmul.f32 0.5, %v1057_v18 }
 0x1d0   : > { %v3043_v1 = vpop.eup %3042  ;;  %v1626_v44 = vadd.f32 1.0, %v3041_v49  ;;  %3056 = vtanh.f32 %v4701_v46  ;;  %v1250_v12 = vadd.f32 %v4455_v5, %v640_v38  ;;  %v1059_v9 = vadd.f32 %v4457_v4, %v640_v38 }
 0x1d1   : > { %v3045_v6 = vpop.eup %3044  ;;  %v4728_v47 = vmul.f32 %v1624_v33, %v4634_v30  ;;  %v1625_v48 = vadd.f32 1.0, %v3043_v1  ;;  %3058 = vtanh.f32 %v4714_v25  ;;  %v1252_v56 = vadd.f32 %v4463_v29, %v640_v38  ;;  %v5130_v1 = vld [vmem:[#allocation10_spill] sm:$0xff] }
 0x1d2   : > { %v3047_v36 = vpop.eup %3046  ;;  %v4733_v45 = vmul.f32 %v1626_v44, %v4636_v10  ;;  %v1627_v14 = vadd.f32 1.0, %v3045_v6  ;;  %3060 = vtanh.f32 %v4716_v24  ;;  %v4736_v61 = vmul.f32 0.5, %v1250_v12 }
 0x1d3   : > { %v3049_v5 = vpop.eup %3048  ;;  %v1743_v4 = vmul.f32 %v1615_v13, %v4551_v28  ;;  %v1621_v23 = vadd.f32 1.0, %v3035_v22  ;;  %v1828_v30 = vpack.c.bf16 %v4728_v47, %v4708_v17  ;;  %v1628_v20 = vadd.f32 1.0, %v3047_v36  ;;  %v5132_v36 = vld [vmem:[#allocation19_spill] sm:$0xff] }
 0x1d4   : > { %v3051_v27 = vpop.eup %3050  ;;  %v1623_v34 = vadd.f32 1.0, %v3037_v57  ;;  %v1830_v29 = vpack.c.bf16 %v4733_v45, %v4719_v41  ;;  %v4744_v10 = vmul.f32 %v1625_v48, %v4645_v40  ;;  %3062 = vtanh.f32 %v4722_v2 }
 0x1d5   : > { %v4748_v58 = vmul.f32 %v1627_v14, %v4647_v60  ;;  %v1630_v28 = vadd.f32 1.0, %v3049_v5  ;;  %v4750_v13 = vmul.f32 0.5, %v1059_v9  ;;  %v4752_v22 = vmul.f32 0.5, %v1252_v56 }
 0x1d6   : > { %3064 = vtanh.f32 %v4736_v61  ;;  %v1825_v38 = vpack.c.bf16 %v4692_v51, %v4678_v7  ;;  %v1827_v43 = vpack.c.bf16 %v1747_v39, %v1743_v4  ;;  %v1061_v40 = vadd.f32 %v5128_v21, %v645_v16  ;;  %v5129_v51 = vld [vmem:[#allocation9_spill] sm:$0xff]  ;;  %v655_v21 = vpop.permute.xlu1 %654 }
 0x1d7   : > { %v4759_v0 = vmul.f32 %v1628_v20, %v4653_v62  ;;  %v1629_v57 = vadd.f32 1.0, %v3051_v27  ;;  %v1254_v60 = vadd.f32 %v4474_v15, %v645_v16  ;;  %v1063_v55 = vadd.f32 %v4476_v59, %v645_v16 }
 0x1d8   : > { %v3053_v18 = vpop.eup %3052  ;;  %3066 = vtanh.f32 %v4750_v13  ;;  %1962 = vmatprep.subr.bf16.mxu0 %v1825_v38  ;;  %2035 = vmatprep.subr.bf16.mxu1 %v1827_v43  ;;  %v4764_v52 = vmul.f32 0.5, %v1061_v40  ;;  %v1256_v7 = vadd.f32 %v4489_v8, %v645_v16  ;;  %v1067_v39 = vadd.f32 %v5129_v51, %v650_v26 }
 0x1d9   : > { %v3055_v49 = vpop.eup %3054  ;;  %v4769_v62 = vmul.f32 %v1630_v28, %v4663_v42  ;;  %3068 = vtanh.f32 %v4752_v22  ;;  %v4772_v15 = vmul.f32 0.5, %v1254_v60  ;;  %1963 = vmatpush1.bf16.msra.mxu0 %v1824_v54  ;;  %2036 = vmatpush1.bf16.msra.mxu1 %v1826_v3  ;;  %v4780_v59 = vmul.f32 0.5, %v1063_v55  ;;  %v5131_v54 = vld [vmem:[#allocation18_spill] sm:$0xff] }
 0x1da   : > { %v3057_v8 = vpop.eup %3056  ;;  %v1632_v33 = vadd.f32 1.0, %v3055_v49  ;;  %3070 = vtanh.f32 %v4764_v52  ;;  %v4783_v42 = vmul.f32 0.5, %v1256_v7  ;;  %v1260_v44 = vadd.f32 %v5130_v1, %v650_v26  ;;  %v5135_v60 = vld [vmem:[#allocation22_spill] sm:$0xff] }
 0x1db   : > { %v3059_v12 = vpop.eup %3058  ;;  %v1631_v9 = vadd.f32 1.0, %v3053_v18  ;;  %v1634_v6 = vadd.f32 1.0, %v3057_v8  ;;  %3072 = vtanh.f32 %v4772_v15  ;;  %v4787_v53 = vmul.f32 0.5, %v1067_v39  ;;  %v5136_v18 = vld [vmem:[#allocation23_spill] sm:$0xff] }
 0x1dc   : > { %v3061_v31 = vpop.eup %3060  ;;  %v1760_v32 = vmul.f32 %v1632_v33, %v4699_v11  ;;  %v1633_v37 = vadd.f32 1.0, %v3059_v12  ;;  %3074 = vtanh.f32 %v4780_v59  ;;  %v1069_v3 = vadd.f32 %v5131_v54, %v650_v26 }
 0x1dd   : > { %v4793_v48 = vmul.f32 %v1634_v6, %v4701_v46  ;;  %v1635_v56 = vadd.f32 1.0, %v3061_v31  ;;  %3076 = vtanh.f32 %v4783_v42  ;;  %v1262_v14 = vadd.f32 %v5132_v36, %v650_v26  ;;  %v5134_v26 = vld [vmem:[#allocation21_spill] sm:$0xff] }
 0x1de   : > { %v3063_v5 = vpop.eup %3062  ;;  %v1749_v4 = vmul.f32 %v1621_v23, %v4617_v19  ;;  %v1751_v20 = vmul.f32 %v1623_v34, %v4619_v63  ;;  %v1832_v11 = vpack.c.bf16 %v1760_v32, %v4759_v0  ;;  %v4800_v27 = vmul.f32 0.5, %v1260_v44 }
 0x1df   : > { %v1757_v16 = vmul.f32 %v1629_v57, %v4672_v35  ;;  %v1759_v28 = vmul.f32 %v1631_v9, %v4694_v50  ;;  %v1834_v46 = vpack.c.bf16 %v4793_v48, %v4769_v62  ;;  %v1761_v38 = vmul.f32 %v1633_v37, %v4714_v25  ;;  %v5133_v50 = vld [vmem:[#allocation20_spill] sm:$0xff] }
 0x1e0   : > { %v3065_v43 = vpop.eup %3064  ;;  %3078 = vtanh.f32 %v4787_v53  ;;  %v4808_v19 = vmul.f32 0.5, %v1069_v3  ;;  %v4810_v63 = vmul.f32 0.5, %v1262_v14  ;;  %v1829_v23 = vpack.c.bf16 %v4744_v10, %v1749_v4 }
 0x1e1   : > { %v1763_v34 = vmul.f32 %v1635_v56, %v4716_v24  ;;  %v1831_v35 = vpack.c.bf16 %v4748_v58, %v1751_v20  ;;  %v1071_v40 = vadd.f32 %v5133_v50, %v655_v21  ;;  %v1264_v0 = vadd.f32 %v5134_v26, %v655_v21 }
 0x1e2   : > { %v3067_v57 = vpop.eup %3066  ;;  %v1636_v25 = vadd.f32 1.0, %v3063_v5  ;;  %3080 = vtanh.f32 %v4800_v27  ;;  %1964 = vmatprep.subr.bf16.mxu0 %v1829_v23  ;;  %v1073_v55 = vadd.f32 %v5135_v60, %v655_v21  ;;  %v1266_v7 = vadd.f32 %v5136_v18, %v655_v21  ;;  %v2833_v18 = vld [vmem:[%s5066_s3 + $0x20] ss:$8 sps:$4 sm:$0xff]  }
 0x1e3   : > { %v3069_v51 = vpop.eup %3068  ;;  %v1638_v39 = vadd.f32 1.0, %v3065_v43  ;;  %3082 = vtanh.f32 %v4808_v19  ;;  %2037 = vmatprep.subr.bf16.mxu1 %v1831_v35  ;;  %v1392_v24 = vmul.f32 0.5, %v1071_v40  ;;  %v1394_v10 = vmul.f32 0.5, %v1264_v0  ;;  %1965 = vmatpush1.bf16.msra.mxu0 %v1828_v30 }
 0x1e4   : > { %v3071_v58 = vpop.eup %3070  ;;  %3084 = vtanh.f32 %v4810_v63  ;;  %2038 = vmatpush1.bf16.msra.mxu1 %v1830_v29  ;;  %v1393_v49 = vmul.f32 0.5, %v1073_v55  ;;  %v1395_v62 = vmul.f32 0.5, %v1266_v7  ;;  %v1833_v8 = vpack.c.bf16 %v1761_v38, %v1757_v16  ;;  %v2834_v7 = vld [vmem:[%s5066_s3 + $0x34] ss:$8 sps:$4 sm:$0xff]  }
 0x1e5   : > { %v3073_v33 = vpop.eup %3072  ;;  %v1637_v1 = vadd.f32 1.0, %v3067_v57  ;;  %v1640_v44 = vadd.f32 1.0, %v3071_v58  ;;  %3086 = vtanh.f32 %v1392_v24  ;;  %v1835_v12 = vpack.c.bf16 %v1763_v34, %v1759_v28 }
 0x1e6   : > { %v3075_v9 = vpop.eup %3074  ;;  %v1639_v6 = vadd.f32 1.0, %v3069_v51  ;;  %v1642_v31 = vadd.f32 1.0, %v3073_v33  ;;  %3088 = vtanh.f32 %v1394_v10  ;;  %1966 = vmatprep.subr.bf16.mxu0 %v1833_v8  ;;  %v1764_v47 = vmul.f32 %v1636_v25, %v4722_v2  ;;  %v2836_v51 = vld [vmem:[%s5066_s3 + $0x30] ss:$8 sps:$4 sm:$0xff]  }
 0x1e7   : > { %v3077_v17 = vpop.eup %3076  ;;  %v1768_v30 = vmul.f32 %v1640_v44, %v4764_v52  ;;  %v1641_v41 = vadd.f32 1.0, %v3075_v9  ;;  %3090 = vtanh.f32 %v1393_v49  ;;  %2039 = vmatprep.subr.bf16.mxu1 %v1835_v12  ;;  %1967 = vmatpush1.bf16.msra.mxu0 %v1832_v11  ;;  %v1766_v45 = vmul.f32 %v1638_v39, %v4736_v61 }
 0x1e8   : > { %v1770_v29 = vmul.f32 %v1642_v31, %v4772_v15  ;;  %v1643_v32 = vadd.f32 1.0, %v3077_v17  ;;  %3092 = vtanh.f32 %v1395_v62  ;;  %2040 = vmatpush1.bf16.msra.mxu1 %v1834_v46  ;;  %v1765_v37 = vmul.f32 %v1637_v1, %v4750_v13 }
 0x1e9   : > { %v1836_v54 = vpack.c.bf16 %v1768_v30, %v1764_v47  ;;  %v1769_v3 = vmul.f32 %v1641_v41, %v4780_v59  ;;  %v1767_v2 = vmul.f32 %v1639_v6, %v4752_v22  ;;  %v5137_v39 = vmov 0  }
 0x1ea   : > { %v3079_v48 = vpop.eup %3078  ;;  %v1838_v52 = vpack.c.bf16 %v1770_v29, %v1766_v45  ;;  %v1771_v56 = vmul.f32 %v1643_v32, %v4783_v42 }
 0x1eb   : > { %v1837_v36 = vpack.c.bf16 %v1769_v3, %v1765_v37  ;;  %v1644_v4 = vadd.f32 1.0, %v3079_v48 }
 0x1ec   : > { %v3081_v14 = vpop.eup %3080  ;;  %v1839_v5 = vpack.c.bf16 %v1771_v56, %v1767_v2 }
 0x1ed   : > { %v3083_v61 = vpop.eup %3082  ;;  %1968 = vmatprep.subr.bf16.mxu0 %v1837_v36  ;;  %v1646_v13 = vadd.f32 1.0, %v3081_v14  ;;  %v1772_v42 = vmul.f32 %v1644_v4, %v4787_v53  ;;  %v2825_v53 = vld [vmem:[%s5066_s3] ss:$8 sps:$4 sm:$0xff]  }
 0x1ee   : > { %v3085_v15 = vpop.eup %3084  ;;  %2041 = vmatprep.subr.bf16.mxu1 %v1839_v5  ;;  %1969 = vmatpush1.bf16.msra.mxu0 %v1836_v54  ;;  %v1645_v59 = vadd.f32 1.0, %v3083_v61 }
 0x1ef   : > { %v3087_v20 = vpop.eup %3086  ;;  %2042 = vmatpush1.bf16.msra.mxu1 %v1838_v52  ;;  %v1647_v22 = vadd.f32 1.0, %v3085_v15  ;;  %v1774_v23 = vmul.f32 %v1646_v13, %v4800_v27  ;;  %v2828_v27 = vld [vmem:[%s5066_s3 + $0x14] ss:$8 sps:$4 sm:$0xff]  }
 0x1f0   : > { %v3089_v11 = vpop.eup %3088  ;;  %v1648_v16 = vadd.f32 1.0, %v3087_v20  ;;  %v1773_v50 = vmul.f32 %v1645_v59, %v4808_v19  ;;  %v2830_v19 = vld [vmem:[%s5066_s3 + $0x10] ss:$8 sps:$4 sm:$0xff]  }
 0x1f1   : > { %v3091_v28 = vpop.eup %3090  ;;  %v1650_v46 = vadd.f32 1.0, %v3089_v11  ;;  %v1775_v0 = vmul.f32 %v1647_v22, %v4810_v63  ;;  %v2831_v63 = vld [vmem:[%s5066_s3 + $0x24] ss:$8 sps:$4 sm:$0xff]  }
 0x1f2   : > { %v3093_v38 = vpop.eup %3092  ;;  %v1776_v43 = vmul.f32 %v1648_v16, %v1392_v24  ;;  %v1649_v21 = vadd.f32 1.0, %v3091_v28  ;;  %v1863_v24 = vpop.permute.xlu0 %1862 }
 0x1f3   : > { %v1778_v34 = vmul.f32 %v1650_v46, %v1394_v10  ;;  %v1651_v35 = vadd.f32 1.0, %v3093_v38  ;;  %v1868_v10 = vpop.permute.xlu1 %1867 }
 0x1f4   : > { %v1840_v40 = vpack.c.bf16 %v1776_v43, %v1772_v42  ;;  %v1777_v26 = vmul.f32 %v1649_v21, %v1393_v49 }
 0x1f5   : > { %v1842_v57 = vpack.c.bf16 %v1778_v34, %v1774_v23  ;;  %v1779_v25 = vmul.f32 %v1651_v35, %v1395_v62 }
 0x1f6   : > { %v1841_v60 = vpack.c.bf16 %v1777_v26, %v1773_v50  ;;  %v1873_v2 = vpop.permute.xlu0 %1872 }
 0x1f7   : > { %v1843_v55 = vpack.c.bf16 %v1779_v25, %v1775_v0  ;;  %v1878_v56 = vpop.permute.xlu1 %1877 }
 0x1f8   : > { %1970 = vmatprep.subr.bf16.mxu0 %v1841_v60 }
 0x1f9   : > { %2043 = vmatprep.subr.bf16.mxu1 %v1843_v55  ;;  %1971 = vmatpush1.bf16.msra.mxu0 %v1840_v40 }
 0x1fa   : > { %2044 = vmatpush1.bf16.msra.mxu1 %v1842_v57  ;;  %v1883_v25 = vpop.permute.xlu0 %1882 }
 0x1fc   : > { %1973 = vmatmul.mubr.bf16.vlgmr.msra.gmra.mrb[64].mxu0 %v2825_v53 }
 0x1fd   : > { %2046 = vmatmul.mubr.bf16.vlgmr.msra.gmra.mrb[64].mxu1 %v2825_v53  ;;  %1982 = vmatprep.mubr.bf16.mxu0 %v2828_v27 }
 0x1fe   : > { %2055 = vmatprep.mubr.bf16.mxu1 %v2828_v27 }
 0x204   : > { %1983 = vmatmul.mubr.bf16.gmra.mrb[68].mxu0 %v2830_v19 }
 0x205   : > { %2056 = vmatmul.mubr.bf16.gmra.mrb[68].mxu1 %v2830_v19  ;;  %1992 = vmatprep.mubr.bf16.mxu0 %v2831_v63 }
 0x206   : > { %2065 = vmatprep.mubr.bf16.mxu1 %v2831_v63 }
 0x20c   : > { %1993 = vmatmul.mubr.bf16.gmra.mrb[72].mxu0 %v2833_v18 }
 0x20d   : > { %2066 = vmatmul.mubr.bf16.gmra.mrb[72].mxu1 %v2833_v18  ;;  %2002 = vmatprep.mubr.bf16.mxu0 %v2834_v7 }
 0x20e   : > { %2075 = vmatprep.mubr.bf16.mxu1 %v2834_v7 }
 0x214   : > { %2003 = vmatmul.mubr.bf16.gmra.mrb[76].mxu0 %v2836_v51 }
 0x215   : > { %2076 = vmatmul.mubr.bf16.gmra.mrb[76].mxu1 %v2836_v51  ;;  %2285 = vmatprep.mubr.bf16.mxu0 %v5137_v39 }
 0x216   : > { %2328 = vmatprep.mubr.bf16.mxu1 %v5137_v39 }
 0x2cf   : > { %v1974_v58 = vpop.f32.mrb[64].mxu0 }
 0x2d0   : > { %v1975_v49 = vadd.f32 %v1974_v58, %v1863_v24  ;;  %v2047_v62 = vpop.f32.mrb[64].mxu1  ;;  %v1976_v8 = vpop.f32.mrb[65].mxu0 }
 0x2d1   : > { %v2048_v33 = vadd.f32 %v2047_v62, %v1863_v24  ;;  %v1977_v1 = vadd.f32 %v1976_v8, %v1863_v24  ;;  %v2049_v44 = vpop.f32.mrb[65].mxu1  ;;  %v1978_v12 = vpop.f32.mrb[66].mxu0 }
 0x2d2   : > { %v4863_v9 = vmul.f32 0.5, %v1975_v49  ;;  %v2050_v6 = vadd.f32 %v2049_v44, %v1863_v24  ;;  %v1979_v31 = vadd.f32 %v1978_v12, %v1868_v10  ;;  %v2051_v17 = vpop.f32.mrb[66].mxu1  ;;  %v1980_v47 = vpop.f32.mrb[67].mxu0 }
 0x2d3   : > { %v4865_v30 = vmul.f32 0.5, %v2048_v33  ;;  %v4867_v41 = vmul.f32 0.5, %v1977_v1  ;;  %v2052_v45 = vadd.f32 %v2051_v17, %v1868_v10  ;;  %v1981_v29 = vadd.f32 %v1980_v47, %v1868_v10  ;;  %v2053_v32 = vpop.f32.mrb[67].mxu1 }
 0x2d4   : > { %3094 = vtanh.f32 %v4863_v9  ;;  %v4870_v37 = vmul.f32 0.5, %v2050_v6  ;;  %v4872_v54 = vmul.f32 0.5, %v1979_v31  ;;  %v2054_v3 = vadd.f32 %v2053_v32, %v1868_v10 }
 0x2d5   : > { %3096 = vtanh.f32 %v4865_v30  ;;  %v4875_v48 = vmul.f32 0.5, %v2052_v45  ;;  %v4878_v52 = vmul.f32 0.5, %v1981_v29 }
 0x2d6   : > { %3098 = vtanh.f32 %v4867_v41  ;;  %v4881_v36 = vmul.f32 0.5, %v2054_v3 }
 0x2d7   : > { %3100 = vtanh.f32 %v4870_v37  ;;  %v1984_v14 = vpop.f32.mrb[68].mxu0 }
 0x2d8   : > { %3102 = vtanh.f32 %v4872_v54  ;;  %v1985_v5 = vadd.f32 %v1984_v14, %v1873_v2  ;;  %v2057_v61 = vpop.f32.mrb[68].mxu1  ;;  %v1986_v15 = vpop.f32.mrb[69].mxu0 }
 0x2d9   : > { %3104 = vtanh.f32 %v4875_v48  ;;  %v2058_v4 = vadd.f32 %v2057_v61, %v1873_v2  ;;  %v1987_v20 = vadd.f32 %v1986_v15, %v1873_v2  ;;  %v2059_v13 = vpop.f32.mrb[69].mxu1  ;;  %v1988_v11 = vpop.f32.mrb[70].mxu0 }
 0x2da   : > { %3106 = vtanh.f32 %v4878_v52  ;;  %v4886_v59 = vmul.f32 0.5, %v1985_v5  ;;  %v2060_v16 = vadd.f32 %v2059_v13, %v1873_v2  ;;  %v1989_v28 = vadd.f32 %v1988_v11, %v1878_v56  ;;  %v2061_v22 = vpop.f32.mrb[70].mxu1  ;;  %v1990_v46 = vpop.f32.mrb[71].mxu0 }
 0x2db   : > { %3108 = vtanh.f32 %v4881_v36  ;;  %v4889_v38 = vmul.f32 0.5, %v2058_v4  ;;  %v4891_v42 = vmul.f32 0.5, %v1987_v20  ;;  %v2062_v43 = vadd.f32 %v2061_v22, %v1878_v56  ;;  %v2063_v21 = vpop.f32.mrb[71].mxu1  ;;  %v1888_v2 = vpop.permute.xlu1 %1887 }
 0x2dc   : > { %3110 = vtanh.f32 %v4886_v59  ;;  %v4894_v23 = vmul.f32 0.5, %v2060_v16  ;;  %v4896_v34 = vmul.f32 0.5, %v1989_v28  ;;  %v1991_v35 = vadd.f32 %v1990_v46, %v1878_v56 }
 0x2dd   : > { %3112 = vtanh.f32 %v4889_v38  ;;  %v4899_v50 = vmul.f32 0.5, %v2062_v43  ;;  %v2064_v40 = vadd.f32 %v2063_v21, %v1878_v56 }
 0x2de   : > { %v3095_v26 = vpop.eup %3094  ;;  %3114 = vtanh.f32 %v4891_v42  ;;  %v4902_v0 = vmul.f32 0.5, %v1991_v35 }
 0x2df   : > { %v3097_v57 = vpop.eup %3096  ;;  %v2150_v60 = vadd.f32 1.0, %v3095_v26  ;;  %3116 = vtanh.f32 %v4894_v23  ;;  %v4905_v55 = vmul.f32 0.5, %v2064_v40  ;;  %v1994_v53 = vpop.f32.mrb[72].mxu0 }
 0x2e0   : > { %v3099_v27 = vpop.eup %3098  ;;  %v2152_v19 = vadd.f32 1.0, %v3097_v57  ;;  %3118 = vtanh.f32 %v4896_v34  ;;  %v1995_v63 = vadd.f32 %v1994_v53, %v1883_v25  ;;  %v2067_v18 = vpop.f32.mrb[72].mxu1 }
 0x2e1   : > { %v1996_v7 = vpop.f32.mrb[73].mxu0  ;;  %v3101_v51 = vpop.eup %3100  ;;  %3120 = vtanh.f32 %v4899_v50  ;;  %v2068_v24 = vadd.f32 %v2067_v18, %v1883_v25  ;;  %v4913_v44 = vmul.f32 %v2150_v60, %v4863_v9  ;;  %v2151_v12 = vadd.f32 1.0, %v3099_v27 }
 0x2e2   : > { %v2069_v10 = vpop.f32.mrb[73].mxu1  ;;  %v1998_v58 = vpop.f32.mrb[74].mxu0  ;;  %3122 = vtanh.f32 %v4902_v0  ;;  %v4910_v62 = vmul.f32 0.5, %v1995_v63  ;;  %v4917_v47 = vmul.f32 %v2152_v19, %v4865_v30  ;;  %v1997_v32 = vadd.f32 %v1996_v7, %v1883_v25 }
 0x2e3   : > { %v3103_v49 = vpop.eup %3102  ;;  %v2071_v8 = vpop.f32.mrb[74].mxu1  ;;  %3124 = vtanh.f32 %v4905_v55  ;;  %v4919_v29 = vmul.f32 0.5, %v2068_v24  ;;  %v2070_v14 = vadd.f32 %v2069_v10, %v1883_v25  ;;  %v1999_v4 = vadd.f32 %v1998_v58, %v1888_v2 }
 0x2e4   : > { %v2000_v33 = vpop.f32.mrb[75].mxu0  ;;  %v3105_v1 = vpop.eup %3104  ;;  %v2154_v6 = vadd.f32 1.0, %v3103_v49  ;;  %3126 = vtanh.f32 %v4910_v62  ;;  %v4928_v30 = vmul.f32 0.5, %v1997_v32  ;;  %v2153_v13 = vadd.f32 1.0, %v3101_v51 }
 0x2e5   : > { %v2073_v31 = vpop.f32.mrb[75].mxu1  ;;  %v3107_v17 = vpop.eup %3106  ;;  %v2156_v45 = vadd.f32 1.0, %v3105_v1  ;;  %v4933_v22 = vmul.f32 %v2151_v12, %v4867_v41  ;;  %3128 = vtanh.f32 %v4919_v29  ;;  %v4942_v25 = vmul.f32 0.5, %v1999_v4 }
 0x2e6   : > { %v3109_v3 = vpop.eup %3108  ;;  %v4922_v56 = vmul.f32 %v2154_v6, %v4872_v54  ;;  %v2155_v9 = vadd.f32 1.0, %v3107_v17  ;;  %3130 = vtanh.f32 %v4928_v30  ;;  %v2072_v19 = vadd.f32 %v2071_v8, %v1888_v2  ;;  %v1893_v49 = vpop.permute.xlu0 %1892 }
 0x2e7   : > { %v3111_v5 = vpop.eup %3110  ;;  %v4926_v61 = vmul.f32 %v2156_v45, %v4875_v48  ;;  %v2157_v15 = vadd.f32 1.0, %v3109_v3  ;;  %v2004_v54 = vpop.f32.mrb[76].mxu0  ;;  %v4938_v48 = vmul.f32 0.5, %v2070_v14  ;;  %v2001_v63 = vadd.f32 %v2000_v33, %v1888_v2 }
 0x2e8   : > { %v3113_v20 = vpop.eup %3112  ;;  %v2214_v11 = vpack.c.bf16 %v4922_v56, %v4913_v44  ;;  %v2158_v16 = vadd.f32 1.0, %v3111_v5  ;;  %v2077_v43 = vpop.f32.mrb[76].mxu1  ;;  %v2187_v40 = vmul.f32 %v2155_v9, %v4878_v52  ;;  %3132 = vtanh.f32 %v4942_v25 }
 0x2e9   : > { %v3115_v28 = vpop.eup %3114  ;;  %v2216_v46 = vpack.c.bf16 %v4926_v61, %v4917_v47  ;;  %v2006_v21 = vpop.f32.mrb[77].mxu0  ;;  %v2189_v26 = vmul.f32 %v2157_v15, %v4881_v36  ;;  %v2160_v57 = vadd.f32 1.0, %v3113_v20  ;;  %v2074_v36 = vadd.f32 %v2073_v31, %v1888_v2 }
 0x2ea   : > { %v3117_v35 = vpop.eup %3116  ;;  %v2079_v60 = vpop.f32.mrb[77].mxu1  ;;  %v4945_v27 = vmul.f32 %v2158_v16, %v4886_v59  ;;  %v2159_v24 = vadd.f32 1.0, %v3115_v28  ;;  %3134 = vtanh.f32 %v4938_v48  ;;  %v4950_v59 = vmul.f32 0.5, %v2072_v19 }
 0x2eb   : > { %v2008_v41 = vpop.f32.mrb[78].mxu0  ;;  %v3119_v53 = vpop.eup %3118  ;;  %v4952_v12 = vmul.f32 0.5, %v2001_v63  ;;  %v2161_v33 = vadd.f32 1.0, %v3117_v35  ;;  %v4957_v17 = vmul.f32 0.5, %v2074_v36  ;;  %v2005_v45 = vadd.f32 %v2004_v54, %v1893_v49 }
 0x2ec   : > { %v2081_v18 = vpop.f32.mrb[78].mxu1  ;;  %v2010_v7 = vpop.f32.mrb[79].mxu0  ;;  %v2162_v52 = vadd.f32 1.0, %v3119_v53  ;;  %v4960_v31 = vmul.f32 %v2160_v57, %v4889_v38  ;;  %3136 = vtanh.f32 %v4950_v59  ;;  %v2078_v3 = vadd.f32 %v2077_v43, %v1893_v49 }
 0x2ed   : > { %v3121_v51 = vpop.eup %3120  ;;  %v2083_v10 = vpop.f32.mrb[79].mxu1  ;;  %v2185_v9 = vmul.f32 %v2153_v13, %v4870_v37  ;;  %3138 = vtanh.f32 %v4952_v12  ;;  %v2191_v5 = vmul.f32 %v2159_v24, %v4891_v42  ;;  %v4975_v4 = vmul.f32 0.5, %v2005_v45 }
 0x2ee   : > { %v3123_v58 = vpop.eup %3122  ;;  %v2164_v1 = vadd.f32 1.0, %v3121_v51  ;;  %v4955_v6 = vmul.f32 %v2162_v52, %v4896_v34  ;;  %3140 = vtanh.f32 %v4957_v17  ;;  %v4977_v20 = vmul.f32 0.5, %v2078_v3  ;;  %v1898_v16 = vpop.permute.xlu1 %1897 }
 0x2ef   : > { %v3125_v8 = vpop.eup %3124  ;;  %v2163_v34 = vadd.f32 1.0, %v3123_v58  ;;  %v2007_v37 = vadd.f32 %v2006_v21, %v1893_v49  ;;  %v2080_v28 = vadd.f32 %v2079_v60, %v1893_v49  ;;  %v2215_v43 = vpack.c.bf16 %v2187_v40, %v4933_v22 }
 0x2f0   : > { %v4963_v32 = vmul.f32 %v2164_v1, %v4899_v50  ;;  %v3127_v2 = vpop.eup %3126  ;;  %v2218_v14 = vpack.c.bf16 %v4955_v6, %v4945_v27  ;;  %v2165_v15 = vadd.f32 1.0, %v3125_v8  ;;  %v2193_v50 = vmul.f32 %v2161_v33, %v4894_v23 }
 0x2f1   : > { %v3129_v13 = vpop.eup %3128  ;;  %v2166_v54 = vadd.f32 1.0, %v3127_v2  ;;  %v2217_v42 = vpack.c.bf16 %v2189_v26, %v2185_v9  ;;  %v2195_v35 = vmul.f32 %v2163_v34, %v4902_v0  ;;  %3142 = vtanh.f32 %v4975_v4  ;;  %2253 = vmatprep.subr.bf16.mxu0 %v2215_v43 }
 0x2f2   : > { %v2220_v38 = vpack.c.bf16 %v4963_v32, %v4960_v31  ;;  %v4982_v57 = vmul.f32 0.5, %v2007_v37  ;;  %v2009_v53 = vadd.f32 %v2008_v41, %v1898_v16  ;;  %v3131_v23 = vpop.eup %3130  ;;  %v2197_v27 = vmul.f32 %v2165_v15, %v4905_v55  ;;  %2254 = vmatpush1.bf16.msra.mxu0 %v2214_v11 }
 0x2f3   : > { %3144 = vtanh.f32 %v4977_v20  ;;  %v4986_v21 = vmul.f32 0.5, %v2080_v28  ;;  %2296 = vmatprep.subr.bf16.mxu1 %v2217_v42  ;;  %v2082_v60 = vadd.f32 %v2081_v18, %v1898_v16  ;;  %v3133_v19 = vpop.eup %3132  ;;  %v2168_v22 = vadd.f32 1.0, %v3129_v13 }
 0x2f4   : > { %3146 = vtanh.f32 %v4982_v57  ;;  %v2114_v0 = vmul.f32 0.5, %v2009_v53  ;;  %2297 = vmatpush1.bf16.msra.mxu1 %v2216_v46  ;;  %v2011_v55 = vadd.f32 %v2010_v7, %v1898_v16  ;;  %v3135_v40 = vpop.eup %3134  ;;  %v2198_v26 = vmul.f32 %v2166_v54, %v4910_v62 }
 0x2f5   : > { %v2170_v41 = vadd.f32 1.0, %v3133_v19  ;;  %3148 = vtanh.f32 %v4986_v21  ;;  %v2116_v63 = vmul.f32 0.5, %v2082_v60  ;;  %v2084_v51 = vadd.f32 %v2083_v10, %v1898_v16 }
 0x2f6   : > { %3150 = vtanh.f32 %v2114_v0  ;;  %v2115_v18 = vmul.f32 0.5, %v2011_v55  ;;  %v2219_v24 = vpack.c.bf16 %v2195_v35, %v2191_v5  ;;  %v3137_v52 = vpop.eup %3136  ;;  %v2167_v36 = vadd.f32 1.0, %v3131_v23 }
 0x2f7   : > { %v2202_v44 = vmul.f32 %v2170_v41, %v4942_v25  ;;  %3152 = vtanh.f32 %v2116_v63  ;;  %v2221_v56 = vpack.c.bf16 %v2197_v27, %v2193_v50  ;;  %v3139_v47 = vpop.eup %3138  ;;  %v2169_v61 = vadd.f32 1.0, %v3135_v40 }
 0x2f8   : > { %v2172_v11 = vadd.f32 1.0, %v3137_v52  ;;  %3154 = vtanh.f32 %v2115_v18  ;;  %v2117_v46 = vmul.f32 0.5, %v2084_v51  ;;  %2255 = vmatprep.subr.bf16.mxu0 %v2219_v24  ;;  %v3141_v62 = vpop.eup %3140  ;;  %v2171_v58 = vadd.f32 1.0, %v3139_v47 }
 0x2f9   : > { %v2222_v7 = vpack.c.bf16 %v2202_v44, %v2198_v26  ;;  %2298 = vmatprep.subr.bf16.mxu1 %v2221_v56  ;;  %2256 = vmatpush1.bf16.msra.mxu0 %v2218_v14  ;;  %v2200_v10 = vmul.f32 %v2168_v22, %v4919_v29  ;;  %v2173_v1 = vadd.f32 1.0, %v3141_v62  ;;  %v2199_v25 = vmul.f32 %v2167_v36, %v4928_v30 }
 0x2fa   : > { %v2204_v49 = vmul.f32 %v2172_v11, %v4950_v59  ;;  %3156 = vtanh.f32 %v2117_v46  ;;  %2299 = vmatpush1.bf16.msra.mxu1 %v2220_v38  ;;  %v2203_v8 = vmul.f32 %v2171_v58, %v4952_v12  ;;  %v2201_v6 = vmul.f32 %v2169_v61, %v4938_v48 }
 0x2fb   : > { %v3143_v33 = vpop.eup %3142  ;;  %v2205_v31 = vmul.f32 %v2173_v1, %v4957_v17 }
 0x2fc   : > { %v2224_v45 = vpack.c.bf16 %v2204_v49, %v2200_v10  ;;  %v2223_v3 = vpack.c.bf16 %v2203_v8, %v2199_v25  ;;  %v2174_v14 = vadd.f32 1.0, %v3143_v33 }
 0x2fd   : > { %v3145_v32 = vpop.eup %3144  ;;  %v2225_v9 = vpack.c.bf16 %v2205_v31, %v2201_v6 }
 0x2fe   : > { %v3147_v2 = vpop.eup %3146  ;;  %2257 = vmatprep.subr.bf16.mxu0 %v2223_v3  ;;  %v2176_v34 = vadd.f32 1.0, %v3145_v32  ;;  %v2206_v15 = vmul.f32 %v2174_v14, %v4975_v4  ;;  %v2837_v4 = vld [vmem:[%s5068_s5] sm:$0xff]  }
 0x2ff   : > { %v3149_v29 = vpop.eup %3148  ;;  %2300 = vmatprep.subr.bf16.mxu1 %v2225_v9  ;;  %2258 = vmatpush1.bf16.msra.mxu0 %v2222_v7  ;;  %v2175_v5 = vadd.f32 1.0, %v3147_v2 }
 0x300   : > { %v3151_v59 = vpop.eup %3150  ;;  %2301 = vmatpush1.bf16.msra.mxu1 %v2224_v45  ;;  %v2177_v17 = vadd.f32 1.0, %v3149_v29  ;;  %v2208_v16 = vmul.f32 %v2176_v34, %v4977_v20  ;;  %v2237_v20 = vpop.permute.xlu0 %2236 }
 0x301   : > { %v3153_v30 = vpop.eup %3152  ;;  %v2178_v12 = vadd.f32 1.0, %v3151_v59  ;;  %v2207_v28 = vmul.f32 %v2175_v5, %v4982_v57 }
 0x302   : > { %v3155_v38 = vpop.eup %3154  ;;  %v2180_v48 = vadd.f32 1.0, %v3153_v30  ;;  %v2209_v23 = vmul.f32 %v2177_v17, %v4986_v21  ;;  %v2242_v21 = vpop.permute.xlu1 %2241 }
 0x303   : > { %v2210_v50 = vmul.f32 %v2178_v12, %v2114_v0  ;;  %v2179_v37 = vadd.f32 1.0, %v3155_v38 }
 0x304   : > { %v3157_v13 = vpop.eup %3156  ;;  %v2212_v54 = vmul.f32 %v2180_v48, %v2116_v63 }
 0x305   : > { %v2226_v43 = vpack.c.bf16 %v2210_v50, %v2206_v15  ;;  %v2211_v42 = vmul.f32 %v2179_v37, %v2115_v18  ;;  %v2181_v35 = vadd.f32 1.0, %v3157_v13 }
 0x306   : > { %v2228_v53 = vpack.c.bf16 %v2212_v54, %v2208_v16 }
 0x307   : > { %v2213_v27 = vmul.f32 %v2181_v35, %v2117_v46  ;;  %v2227_v60 = vpack.c.bf16 %v2211_v42, %v2207_v28  ;;  %v2375_v28 = vld [vmem:[%s5070_s7] sm:$0x1]  ;;  %v3239_v35 = vmov 1966171168  }
 0x309   : > { %2259 = vmatprep.subr.bf16.mxu0 %v2227_v60  ;;  %v2229_v19 = vpack.c.bf16 %v2213_v27, %v2209_v23  ;;  %v2380_v27 = vpop.permute.xlu0 %2379 }
 0x30a   : > { %2260 = vmatpush1.bf16.msra.mxu0 %v2226_v43  ;;  %v2382_v43 = vlaneseq }
 0x30b   : > { %2302 = vmatprep.subr.bf16.mxu1 %v2229_v19 }
 0x30c   : > { %2303 = vmatpush1.bf16.msra.mxu1 %v2228_v53  ;;  %v2383_v42 = vshrl.u32 %v2382_v43, 7  ;;  %v2479_v53 = vunpack.c.l.s4 %v3239_v35  ;;  %vm2503_vm3 = vcmp.lt.s32.totalorder %v2382_v43, 512 }
 0x30d   : > { %2644 = vmatmul.mubr.msk.bf16.vlgmr.msra.gmra.mrb[80].mxu0 %vm2249_vm1, %v2837_v4 }
 0x30e   : > { %2422 = vmatprep.mubr.bf16.mxu0 %v5137_v39  ;;  %v2384_v23 = vsub.s32 0, %v2383_v42  ;;  %v2480_v60 = vunpack.c.0.s8 %v2479_v53 }
 0x30f   : > { %2645 = vmatmul.mubr.msk.bf16.vlgmr.msra.gmra.mrb[80].mxu1 %vm2249_vm1, %v2837_v4 }
 0x310   : > { %2463 = vmatprep.mubr.bf16.mxu1 %v5137_v39  ;;  %v2385_v19 = vrot.slane %v2380_v27, %v2384_v23 }
 0x3e0   : > { %v2287_v57 = vpop.f32.mrb[80].mxu0 }
 0x3e1   : > { %v2288_v22 = vadd.f32 %v2287_v57, %v2237_v20  ;;  %v2289_v0 = vpop.f32.mrb[81].mxu0 }
 0x3e2   : > { %v2330_v55 = vpop.f32.mrb[80].mxu1  ;;  %v2290_v40 = vadd.f32 %v2289_v0, %v2237_v20  ;;  %v2291_v26 = vpop.f32.mrb[82].mxu0 }
 0x3e3   : > { %v2339_v41 = vmul.f32 0.5, %v2288_v22  ;;  %v2331_v63 = vadd.f32 %v2330_v55, %v2237_v20  ;;  %v2332_v18 = vpop.f32.mrb[81].mxu1  ;;  %v2292_v51 = vadd.f32 %v2291_v26, %v2242_v21  ;;  %v2293_v24 = vpop.f32.mrb[83].mxu0  ;;  %v2483_v22 = vsub.s32 %v2480_v60, %v2383_v42 }
 0x3e4   : > { %v2340_v52 = vmul.f32 0.5, %v2290_v40  ;;  %v2333_v36 = vadd.f32 %v2332_v18, %v2237_v20  ;;  %v2334_v44 = vpop.f32.mrb[82].mxu1  ;;  %v2294_v56 = vadd.f32 %v2293_v24, %v2242_v21 }
 0x3e5   : > { %3158 = vtanh.f32 %v2339_v41  ;;  %v2341_v47 = vmul.f32 0.5, %v2331_v63  ;;  %v2343_v39 = vmul.f32 0.5, %v2292_v51  ;;  %v2335_v61 = vadd.f32 %v2334_v44, %v2242_v21  ;;  %v2336_v11 = vpop.f32.mrb[83].mxu1 }
 0x3e6   : > { %3160 = vtanh.f32 %v2340_v52  ;;  %v2342_v46 = vmul.f32 0.5, %v2333_v36  ;;  %v2337_v62 = vadd.f32 %v2336_v11, %v2242_v21  ;;  %v2344_v58 = vmul.f32 0.5, %v2294_v56 }
 0x3e7   : > { %3162 = vtanh.f32 %v2341_v47  ;;  %v2345_v7 = vmul.f32 0.5, %v2335_v61 }
 0x3e8   : > { %3164 = vtanh.f32 %v2342_v46  ;;  %v2346_v10 = vmul.f32 0.5, %v2337_v62 }
 0x3e9   : > { %3166 = vtanh.f32 %v2343_v39 }
 0x3ea   : > { %3168 = vtanh.f32 %v2345_v7 }
 0x3eb   : > { %3170 = vtanh.f32 %v2344_v58 }
 0x3ec   : > { %3172 = vtanh.f32 %v2346_v10 }
 0x3ef   : > { %v3159_v49 = vpop.eup %3158 }
 0x3f0   : > { %v3161_v1 = vpop.eup %3160  ;;  %v2355_v33 = vadd.f32 1.0, %v3159_v49 }
 0x3f1   : > { %v3163_v25 = vpop.eup %3162  ;;  %v2356_v32 = vadd.f32 1.0, %v3161_v1 }
 0x3f2   : > { %v3165_v8 = vpop.eup %3164  ;;  %v2357_v45 = vadd.f32 1.0, %v3163_v25  ;;  %v2363_v59 = vmul.f32 %v2355_v33, %v2339_v41 }
 0x3f3   : > { %v3167_v6 = vpop.eup %3166  ;;  %v2358_v9 = vadd.f32 1.0, %v3165_v8  ;;  %v2364_v48 = vmul.f32 %v2356_v32, %v2340_v52 }
 0x3f4   : > { %v3169_v31 = vpop.eup %3168  ;;  %v2359_v3 = vadd.f32 1.0, %v3167_v6  ;;  %v2365_v5 = vmul.f32 %v2357_v45, %v2341_v47 }
 0x3f5   : > { %v3171_v2 = vpop.eup %3170  ;;  %v2361_v29 = vadd.f32 1.0, %v3169_v31  ;;  %v2366_v50 = vmul.f32 %v2358_v9, %v2342_v46 }
 0x3f6   : > { %v3173_v14 = vpop.eup %3172  ;;  %v2367_v34 = vmul.f32 %v2359_v3, %v2343_v39  ;;  %v2360_v30 = vadd.f32 1.0, %v3171_v2 }
 0x3f7   : > { %v2369_v12 = vmul.f32 %v2361_v29, %v2345_v7  ;;  %v2362_v38 = vadd.f32 1.0, %v3173_v14 }
 0x3f8   : > { %v2371_v15 = vpack.c.bf16 %v2367_v34, %v2363_v59  ;;  %v2368_v17 = vmul.f32 %v2360_v30, %v2344_v58 }
 0x3f9   : > { %v2373_v37 = vpack.c.bf16 %v2369_v12, %v2365_v5  ;;  %v2370_v13 = vmul.f32 %v2362_v38, %v2346_v10 }
 0x3fa   : > { %v2372_v16 = vpack.c.bf16 %v2368_v17, %v2364_v48 }
 0x3fb   : > { %v2374_v54 = vpack.c.bf16 %v2370_v13, %v2366_v50 }
 0x3fc   : > { %2390 = vmatprep.subr.bf16.mxu0 %v2372_v16 }
 0x3fd   : > { %2431 = vmatprep.subr.bf16.mxu1 %v2374_v54  ;;  %2391 = vmatpush1.bf16.msra.mxu0 %v2371_v15 }
 0x3fe   : > { %2432 = vmatpush1.bf16.msra.mxu1 %v2373_v37 }
 0x400   : > { %2646 = vmatmul.mubr.msk.bf16.vlgmr.msra.gmra.mrb[84].mxu0 %vm2386_vm2, %v2375_v28 }
 0x401   : > { %2647 = vmatmul.mubr.msk.bf16.vlgmr.msra.gmra.mrb[84].mxu1 %vm2386_vm2, %v2375_v28 }
 0x4d3   : > { %v2424_v4 = vpop.f32.mrb[84].mxu0 }
 0x4d4   : > { %v2425_v20 = vadd.f32 %v2424_v4, %v2385_v19  ;;  %v2465_v57 = vpop.f32.mrb[84].mxu1  ;;  %v2426_v21 = vpop.f32.mrb[85].mxu0 }
 0x4d5   : > { %v2466_v0 = vadd.f32 %v2465_v57, %v2385_v19  ;;  %v2427_v55 = vadd.f32 %v2426_v21, %v2385_v19  ;;  %v2467_v40 = vpop.f32.mrb[85].mxu1  ;;  %v2428_v26 = vpop.f32.mrb[86].mxu0 }
 0x4d6   : > { %v2468_v41 = vadd.f32 %v2467_v40, %v2385_v19  ;;  %v2469_v63 = vpop.f32.mrb[86].mxu1  ;;  %v2429_v18 = vpop.f32.mrb[87].mxu0 }
 0x4d7   : > { %v2476_v51 = vcombine.low %v2425_v20, %v2427_v55  ;;  %v2470_v24 = vpop.f32.mrb[87].mxu1 }
 0x4d8   : > { %v2477_v52 = vcombine.low %v2466_v0, %v2468_v41 }
 0x4d9   : > { %v2484_v36 = vrot.slane %v2476_v51, %v2483_v22 }
 0x4da   : > { %v2491_v44 = vrot.slane %v2477_v52, %v2483_v22 }
 0x4dc   : > { %v2492_v56 = vcombine.low %v2484_v36, %v2491_v44 }
 0x4de   : > { %v2499_v47 = vrot.slane %v2492_v56, %v2483_v22 }
 0x4e0   : > { %2505 = vst.msk [vmem:[%s328_s24] sm:$0xf] %vm2503_vm3, %v2499_v47 }
 0x4e1   : > { %3187 = shalt.err (!%p3184_p3)
}
 0x4e2   : > { %s3188_s22 = scalar_lea.hbm %s5021_s30, 64  ;;  %s3192_s26 = scalar_lea.hbm %s5072_s9, 128 }
 0x4e3   : > { %p3189_p4 = scmp.ne.s32.totalorder %s5021_s30, %s3188_s22  ;;  %p3193_p9 = scmp.lt.u32.totalorder %s5021_s30, %s5072_s9 }
 0x4e4   : > { %p3194_p10 = scmp.lt.u32.totalorder %s3192_s26, %s3188_s22  ;;  %p3196_p12 = scmp.lt.u32.totalorder %s3188_s22, %s5021_s30 }
 0x4e5   : > { %p3190_p7 = pnand %p3189_p4, %p3329_p5 }
 0x4e6   : > { %p3195_p11 = por %p3194_p10, %p3193_p9 }
 0x4e7   : > { %p3191_p8 = pneg %p3190_p7 }
 0x4e8   : > { %p3197_p13 = por %p3196_p12, %p3195_p11 }
 0x4ea   : > { %p3198_p0 = pnand %p3197_p13, %p3191_p8 }
 0x4ec   : > { %3201 = shalt.err (!%p3198_p0)
}
 0x4ed   : > { %2766 = dma.vmem_to_hbm [thread:$0]  (%p3329_p5), %s5023_s27, 64, %s5021_s30, %s2507_s10  }
 0x4ee PF: > { %p2772_p1 = scmp.ge.s32.totalorder %s3236_s14, 2  ;;  %s2533_s29 = sand.u32 1, %s3224_s11  }
 0x4ef   : > { %s2534_s8 = scalar_lea.sflag [#allocation4], %s2533_s29 }
 0x4f0   : > { %p2769_p2 = pnand %p2772_p1, %p3333_p6 }
 0x4f2   : > { %3219 = dma.done.wait (!%p2769_p2), %s2534_s8, 64  }
 0x4f3   : > { %3221 = vsyncadd (!%p2769_p2), %s2534_s8, 4294967232  ;;  %p21_p3 = scmp.ge.s32.totalorder %s3317_s16, 4   ;;  %s5138_s11 = smov %s3228_s12 }
 0x4f4   : > { %s5139_s12 = smov %s3232_s13  ;;  %s5140_s13 = smov %s3327_s19 }
 0x4f5   : > { %s5141_s14 = smov %s3317_s16  ;;  %23 = sbr.rel (!%p21_p3) target bundleno = 6 (0x6), region = 91 }
 0x4fc   :  { %2539 = vsyncpa [#allocation4], 1 }
 0x4fd   :  { %2541 = vsyncpa [#allocation4 + $0x1], 1 }

</bundles_post_ra>
